<compile_context>
chip_gen: v7x
topology: tpu7x:2x2x1
jax: 0.10.0
libtpu: 0.0.40
codegen_flags: <defaults>
</compile_context>

<pallas_src>
import functools

import jax
import jax.numpy as jnp
from jax import lax
from jax.experimental import pallas as pl
from jax.experimental.pallas import tpu as pltpu

EPS = 1e-6
NEG_INF = -1e30  # finite "minus infinity" so exp(m_old - m_new) never NaNs


# ----------------------------- shared math ---------------------------------
def _rmsnorm(x, w):
    ms = jnp.mean(x * x, axis=-1, keepdims=True)
    return x * lax.rsqrt(ms + EPS) * w


def _rotate_half_unsigned(t, head_dim):
    """concat([t[:, half:], t[:, :half]]) — the sign lives in the sin table."""
    half = head_dim // 2
    if head_dim % 128 == 0:
        # Lane-aligned production path: a single XLU rotate (free slot when the
        # kernel is MXU/VPU bound), no unaligned slice/concat relayouts.
        return pltpu.roll(t, shift=half, axis=-1)
    # Toy-shape fallback (head_dim < 128): slice/concat is safe everywhere.
    return jnp.concatenate([t[:, half:], t[:, :half]], axis=-1)


@functools.lru_cache(maxsize=None)
def _vmem_limit_bytes():
    """Explicit per-generation VMEM budget (v5e/v6e 128 MiB, v7x 64 MiB)."""
    try:
        cap = int(pltpu.get_tpu_info().vmem_capacity_bytes)
    except Exception:
        cap = 64 * 1024 * 1024          # conservative default (v7x-sized)
    return max(32 * 1024 * 1024, (cap * 3) // 4)   # ~25% headroom


# ----------------------------- Pallas kernels -------------------------------
def _attn_kernel(x_ref, anw_ref, mnw_ref, wq_ref, wk_ref, wv_ref, wo_ref,
                 cos_ref, sinp_ref, h1_ref, hn_ref,
                 q_sc, k_sc, v_sc, attn_sc, *, num_heads, head_dim, kv_tile):
    """Self-attention + residual for one batch element.  grid = (B,).

    Outputs: h1 = x + Attn(RMSNorm(x))  (f32 residual stream)
             hn = RMSNorm(h1)           (bf16, consumed by the FFN kernel)
    """
    x = x_ref[0]                                   # (S, D) f32
    S = x.shape[0]
    Hd = head_dim

    xn = _rmsnorm(x, anw_ref[...]).astype(jnp.bfloat16)

    # Fused projections: one (S, D) @ (D, H*Hd) MXU matmul each.
    # The 1/sqrt(Hd) softmax scale is pre-folded into wq (parameter prep).
    q_all = jnp.dot(xn, wq_ref[...], preferred_element_type=jnp.float32)
    k_all = jnp.dot(xn, wk_ref[...], preferred_element_type=jnp.float32)

    cos = cos_ref[...]                             # (S, Hd) f32
    sinp = sinp_ref[...]                           # sign-folded sin

    # Stage RoPE'd q/k and v in bf16 VMEM scratch (halves intermediate
    # footprint and feeds the MXU with bf16; no f32 full-width carries below).
    for h in range(num_heads):
        sl = slice(h * Hd, (h + 1) * Hd)
        q_sc[:, sl] = (q_all[:, sl] * cos +
                       _rotate_half_unsigned(q_all[:, sl], Hd) * sinp
                       ).astype(jnp.bfloat16)
        k_sc[:, sl] = (k_all[:, sl] * cos +
                       _rotate_half_unsigned(k_all[:, sl], Hd) * sinp
                       ).astype(jnp.bfloat16)
    v_sc[...] = jnp.dot(xn, wv_ref[...],
                        preferred_element_type=jnp.float32).astype(jnp.bfloat16)

    # Per-tile causal mask pieces built once (not per head / per (S,S) iota).
    rows = lax.broadcasted_iota(jnp.int32, (S, kv_tile), 0)
    cols = lax.broadcasted_iota(jnp.int32, (S, kv_tile), 1)
    n_kv = S // kv_tile

    for h in range(num_heads):
        sl = slice(h * Hd, (h + 1) * Hd)
        q = q_sc[:, sl]                            # (S, Hd) bf16

        def kv_step(i, carry, q=q, sl=sl):
            m, l, acc = carry
            start = pl.multiple_of(i * kv_tile, kv_tile)
            k = k_sc[pl.ds(start, kv_tile), sl]    # (kv_tile, Hd) bf16
            v = v_sc[pl.ds(start, kv_tile), sl]
            s = lax.dot_general(q, k, (((1,), (1,)), ((), ())),
                                preferred_element_type=jnp.float32)
            s = jnp.where(rows >= cols + i * kv_tile, s, NEG_INF)
            m_new = jnp.maximum(m, jnp.max(s, axis=-1, keepdims=True))
            alpha = jnp.exp(m - m_new)
            p = jnp.exp(s - m_new)
            l_new = alpha * l + jnp.sum(p, axis=-1, keepdims=True)
            acc_new = alpha * acc + jnp.dot(p.astype(jnp.bfloat16), v,
                                            preferred_element_type=jnp.float32)
            return m_new, l_new, acc_new

        m0 = jnp.full((S, 1), NEG_INF, jnp.float32)
        l0 = jnp.zeros((S, 1), jnp.float32)
        a0 = jnp.zeros((S, Hd), jnp.float32)
        _, l, acc = lax.fori_loop(0, n_kv, kv_step, (m0, l0, a0))

        # Write this head's output straight into its column slice (no concat).
        attn_sc[:, sl] = (acc * pl.reciprocal(l, approx=True)   # EUP recip
                          ).astype(jnp.bfloat16)

    # Fused output projection from the bf16 scratch: (S, H*Hd) @ (H*Hd, D).
    attn = jnp.dot(attn_sc[...], wo_ref[...], preferred_element_type=jnp.float32)
    h1 = x + attn
    h1_ref[0] = h1
    hn_ref[0] = _rmsnorm(h1, mnw_ref[...]).astype(jnp.bfloat16)


def _ffn_kernel(h1_ref, hn_ref, w1_ref, w2_ref, w3_ref, o_ref):
    """SwiGLU MLP + residual, streamed over hidden-dim tiles. grid = (B, F//tf)."""
    f = pl.program_id(1)

    @pl.when(f == 0)
    def _init():                                   # residual accumulator init
        o_ref[0] = h1_ref[0]

    hn = hn_ref[0]                                 # (S, D) bf16, pre-normalized
    g = jnp.dot(hn, w1_ref[...], preferred_element_type=jnp.float32)
    u = jnp.dot(hn, w3_ref[...], preferred_element_type=jnp.float32)
    act = g * jax.nn.sigmoid(g)                    # SiLU in f32
    o_ref[0] = o_ref[0] + jnp.dot((act * u).astype(jnp.bfloat16), w2_ref[...],
                                  preferred_element_type=jnp.float32)


def _final_norm_kernel(x_ref, nw_ref, o_ref):
    """Final RMSNorm, emitted once in bf16 so the head kernel is matmul-only."""
    o_ref[0] = _rmsnorm(x_ref[0], nw_ref[...]).astype(jnp.bfloat16)


def _head_kernel(xn_ref, wout_ref, o_ref):
    """One vocab tile of the output projection (input already normalized)."""
    o_ref[0] = jnp.dot(xn_ref[0], wout_ref[...], preferred_element_type=jnp.float32)


# ----------------------------- wrappers -------------------------------------
def attention_forward(x, lp, cos, sin_signed, *, num_heads, head_dim, kv_tile=512):
    B, S, D = x.shape
    HHd = lp["wq"].shape[1]
    Hd = head_dim
    kv_tile = min(kv_tile, S)
    # kv tiles must align with bf16 sublane packing of the k/v scratch.
    assert S % kv_tile == 0 and kv_tile % 16 == 0

    inv = pl.Buffered(1)   # single-buffer grid-invariant blocks (VMEM saver)
    in_specs = [
        pl.BlockSpec((1, S, D), lambda b: (b, 0, 0)),                      # x
        pl.BlockSpec((1, D), lambda b: (0, 0), pipeline_mode=inv),         # attn norm
        pl.BlockSpec((1, D), lambda b: (0, 0), pipeline_mode=inv),         # mlp norm
        pl.BlockSpec((D, HHd), lambda b: (0, 0), pipeline_mode=inv),       # wq (scaled)
        pl.BlockSpec((D, HHd), lambda b: (0, 0), pipeline_mode=inv),       # wk
        pl.BlockSpec((D, HHd), lambda b: (0, 0), pipeline_mode=inv),       # wv
        pl.BlockSpec((HHd, D), lambda b: (0, 0), pipeline_mode=inv),       # wo
        pl.BlockSpec((S, Hd), lambda b: (0, 0), pipeline_mode=inv),        # rope cos
        pl.BlockSpec((S, Hd), lambda b: (0, 0), pipeline_mode=inv),        # rope sin*
    ]
    out_specs = [
        pl.BlockSpec((1, S, D), lambda b: (b, 0, 0)),   # h1 (f32)
        pl.BlockSpec((1, S, D), lambda b: (b, 0, 0)),   # RMSNorm(h1) (bf16)
    ]
    return pl.pallas_call(
        functools.partial(_attn_kernel, num_heads=num_heads, head_dim=Hd,
                          kv_tile=kv_tile),
        out_shape=(jax.ShapeDtypeStruct((B, S, D), jnp.float32),
                   jax.ShapeDtypeStruct((B, S, D), jnp.bfloat16)),
        grid_spec=pltpu.PrefetchScalarGridSpec(
            num_scalar_prefetch=0, grid=(B,),
            in_specs=in_specs, out_specs=out_specs,
            scratch_shapes=[pltpu.VMEM((S, HHd), jnp.bfloat16)] * 4),
        compiler_params=pltpu.CompilerParams(
            dimension_semantics=("parallel",),
            vmem_limit_bytes=_vmem_limit_bytes()),
    )(x, lp["attn_norm"], lp["mlp_norm"], lp["wq"], lp["wk"], lp["wv"],
      lp["wo"], cos, sin_signed)


def ffn_forward(h1, hn, lp, *, tf=512):
    B, S, D = h1.shape
    F = lp["w1"].shape[1]
    tf = min(tf, F)            # 512 fills the 256-wide MXU (v6e/v7x); clamp at toy sizes
    assert F % tf == 0

    in_specs = [
        pl.BlockSpec((1, S, D), lambda b, f: (b, 0, 0)),   # h1 residual (f32)
        pl.BlockSpec((1, S, D), lambda b, f: (b, 0, 0)),   # RMSNorm(h1) (bf16)
        # Streamed FFN tiles; sweep pipeline depth (default 2) vs Buffered(3)
        # once VMEM headroom is confirmed on the target generation.
        pl.BlockSpec((D, tf), lambda b, f: (0, f)),        # w1 column tile
        pl.BlockSpec((tf, D), lambda b, f: (f, 0)),        # w2 row tile
        pl.BlockSpec((D, tf), lambda b, f: (0, f)),        # w3 column tile
    ]
    out_spec = pl.BlockSpec((1, S, D), lambda b, f: (b, 0, 0))
    return pl.pallas_call(
        _ffn_kernel,
        out_shape=jax.ShapeDtypeStruct((B, S, D), jnp.float32),
        grid_spec=pltpu.PrefetchScalarGridSpec(
            num_scalar_prefetch=0, grid=(B, F // tf),
            in_specs=in_specs, out_specs=out_spec),
        compiler_params=pltpu.CompilerParams(
            dimension_semantics=("parallel", "arbitrary"),
            vmem_limit_bytes=_vmem_limit_bytes()),
    )(h1, hn, lp["w1"], lp["w2"], lp["w3"])


def final_norm_forward(h, norm_w):
    B, S, D = h.shape
    return pl.pallas_call(
        _final_norm_kernel,
        out_shape=jax.ShapeDtypeStruct((B, S, D), jnp.bfloat16),
        grid_spec=pltpu.PrefetchScalarGridSpec(
            num_scalar_prefetch=0, grid=(B,),
            in_specs=[pl.BlockSpec((1, S, D), lambda b: (b, 0, 0)),
                      pl.BlockSpec((1, D), lambda b: (0, 0),
                                   pipeline_mode=pl.Buffered(1))],
            out_specs=pl.BlockSpec((1, S, D), lambda b: (b, 0, 0))),
        compiler_params=pltpu.CompilerParams(
            dimension_semantics=("parallel",),
            vmem_limit_bytes=_vmem_limit_bytes()),
    )(h, norm_w)


def head_forward(xn, out_w, *, tv=512):
    """Output projection.  Batch OUTER / vocab INNER: the (S, D) bf16 activation
    is DMA'd once per batch element while W_out tiles stream; lane-dense stores."""
    B, S, D = xn.shape
    V = out_w.shape[1]
    tv = min(tv, V)
    assert V % tv == 0

    in_specs = [
        pl.BlockSpec((1, S, D), lambda b, v: (b, 0, 0)),   # pre-normalized bf16
        pl.BlockSpec((D, tv), lambda b, v: (0, v)),        # vocab tile of W_out
    ]
    out_spec = pl.BlockSpec((1, S, tv), lambda b, v: (b, 0, v))
    return pl.pallas_call(
        _head_kernel,
        out_shape=jax.ShapeDtypeStruct((B, S, V), jnp.float32),
        grid_spec=pltpu.PrefetchScalarGridSpec(
            num_scalar_prefetch=0, grid=(B, V // tv),       # batch outer, vocab inner
            in_specs=in_specs, out_specs=out_spec),
        compiler_params=pltpu.CompilerParams(
            dimension_semantics=("parallel", "parallel"),
            vmem_limit_bytes=_vmem_limit_bytes()),
    )(xn, out_w)


def transformer_decoder_forward(tokens, prepared, cos, sin, *, num_heads, head_dim,
                                kv_tile=512, tf=512, tv=512):
    half = head_dim // 2
    # Fold the rotate-half sign into the sin table so the kernel only needs an
    # UNSIGNED rotation (pltpu.roll on lane-aligned head_dim).
    sin_signed = jnp.concatenate([-sin[:, :half], sin[:, half:]], axis=-1)

    h = prepared["tok_embeddings"][tokens]          # embedding gather: plain-JAX glue
    for lp in prepared["layers"]:
        h1, hn = attention_forward(h, lp, cos, sin_signed,
                                   num_heads=num_heads, head_dim=head_dim,
                                   kv_tile=kv_tile)
        h = ffn_forward(h1, hn, lp, tf=tf)
    xn = final_norm_forward(h, prepared["norm_w"])
    return head_forward(xn, prepared["out_w"], tv=tv)   # f32 (.float())


# ----------------------------- params / RoPE --------------------------------
def rope_tables(seq_len, head_dim, theta=10000.0):
    half = head_dim // 2
    inv_freq = 1.0 / (theta ** (jnp.arange(0, half, dtype=jnp.float32) / half))
    pos = jnp.arange(seq_len, dtype=jnp.float32)
    ang = pos[:, None] * inv_freq[None, :]                          # (S, half)
    cos = jnp.concatenate([jnp.cos(ang), jnp.cos(ang)], axis=-1)    # (S, Hd)
    sin = jnp.concatenate([jnp.sin(ang), jnp.sin(ang)], axis=-1)    # (S, Hd)
    return cos, sin


def init_params(key, *, vocab, dim, n_heads, head_dim, hidden, n_layers):
    keys = jax.random.split(key, 2 + n_layers)
    params = {
        "tok_embeddings": 0.02 * jax.random.normal(keys[0], (vocab, dim), jnp.float32),
        "out_w": 0.02 * jax.random.normal(keys[1], (dim, vocab), jnp.float32),
        "norm_w": jnp.ones((1, dim), jnp.float32),
        "layers": [],
    }
    for i in range(n_layers):
        lk = jax.random.split(keys[2 + i], 7)
        params["layers"].append(dict(
            attn_norm=jnp.ones((1, dim), jnp.float32),
            mlp_norm=jnp.ones((1, dim), jnp.float32),
            wq=0.05 * jax.random.normal(lk[0], (n_heads, dim, head_dim), jnp.float32),
            wk=0.05 * jax.random.normal(lk[1], (n_heads, dim, head_dim), jnp.float32),
            wv=0.05 * jax.random.normal(lk[2], (n_heads, dim, head_dim), jnp.float32),
            wo=0.05 * jax.random.normal(lk[3], (n_heads, head_dim, dim), jnp.float32),
            w1=0.05 * jax.random.normal(lk[4], (dim, hidden), jnp.float32),
            w2=0.05 * jax.random.normal(lk[5], (hidden, dim), jnp.float32),
            w3=0.05 * jax.random.normal(lk[6], (dim, hidden), jnp.float32),
        ))
    return params


def prepare_params(params, *, head_dim):
    """Fuse per-head projections into wide matmuls and cast weights to bf16."""
    scale = 1.0 / (head_dim ** 0.5)

    def fuse_qkv(w):                      # (H, D, Hd) -> (D, H*Hd)
        H, D, Hd = w.shape
        return jnp.transpose(w, (1, 0, 2)).reshape(D, H * Hd)

    prepared = {
        "tok_embeddings": params["tok_embeddings"],      # f32 (gather)
        "norm_w": params["norm_w"],                      # f32 (norm math in f32)
        "out_w": params["out_w"].astype(jnp.bfloat16),
        "layers": [],
    }
    for lp in params["layers"]:
        H, D, Hd = lp["wq"].shape
        prepared["layers"].append(dict(
            attn_norm=lp["attn_norm"],
            mlp_norm=lp["mlp_norm"],
            wq=(fuse_qkv(lp["wq"]) * scale).astype(jnp.bfloat16),  # fold 1/sqrt(Hd)
            wk=fuse_qkv(lp["wk"]).astype(jnp.bfloat16),
            wv=fuse_qkv(lp["wv"]).astype(jnp.bfloat16),
            wo=lp["wo"].reshape(H * Hd, D).astype(jnp.bfloat16),
            w1=lp["w1"].astype(jnp.bfloat16),
            w2=lp["w2"].astype(jnp.bfloat16),
            w3=lp["w3"].astype(jnp.bfloat16),
        ))
    return prepared


# ----------------------------- pure-JAX f32 reference ------------------------
def reference_forward(tokens, params, cos, sin):
    h = params["tok_embeddings"][tokens]
    B, S, D = h.shape
    half = cos.shape[1] // 2
    causal = jnp.arange(S)[:, None] >= jnp.arange(S)[None, :]

    def rot_half(t):
        return jnp.concatenate([-t[:, half:], t[:, :half]], axis=-1)

    for lp in params["layers"]:
        H, _, Hd = lp["wq"].shape
        scale = 1.0 / (Hd ** 0.5)
        out = []
        for b in range(B):
            x = h[b]
            xn = _rmsnorm(x, lp["attn_norm"])
            attn_out = jnp.zeros_like(x)
            for hh in range(H):
                q = xn @ lp["wq"][hh]
                k = xn @ lp["wk"][hh]
                v = xn @ lp["wv"][hh]
                q = q * cos + rot_half(q) * sin
                k = k * cos + rot_half(k) * sin
                s = (q @ k.T) * scale
                s = jnp.where(causal, s, NEG_INF)
                p = jax.nn.softmax(s, axis=-1)
                attn_out = attn_out + (p @ v) @ lp["wo"][hh]
            h1 = x + attn_out
            hn = _rmsnorm(h1, lp["mlp_norm"])
            g = hn @ lp["w1"]
            u = hn @ lp["w3"]
            out.append(h1 + (g * jax.nn.sigmoid(g) * u) @ lp["w2"])
        h = jnp.stack(out, axis=0)
    hn = _rmsnorm(h, params["norm_w"])
    return (hn @ params["out_w"]).astype(jnp.float32)


# ----------------------------- main ------------------------------------------
if __name__ == "__main__":
    B, S = 2, 32
    VOCAB, DIM, HEADS, HEAD_DIM, HIDDEN, LAYERS = 256, 32, 4, 8, 256, 2
    KV_TILE = 16   # 2 kv tiles at S=32 -> exercises the online-softmax recurrence

    key = jax.random.PRNGKey(0)
    pkey, tkey = jax.random.split(key)
    params = init_params(pkey, vocab=VOCAB, dim=DIM, n_heads=HEADS,
                         head_dim=HEAD_DIM, hidden=HIDDEN, n_layers=LAYERS)
    prepared = prepare_params(params, head_dim=HEAD_DIM)
    cos, sin = rope_tables(S, HEAD_DIM)
    tokens = jax.random.randint(tkey, (B, S), 0, VOCAB, dtype=jnp.int32)

    logits = transformer_decoder_forward(tokens, prepared, cos, sin,
                                         num_heads=HEADS, head_dim=HEAD_DIM,
                                         kv_tile=KV_TILE)
    logits = jax.block_until_ready(logits)

    assert logits.shape == (B, S, VOCAB) and logits.dtype == jnp.float32
    ref = reference_forward(tokens, params, cos, sin)
    # bf16 matmul operands (f32 accumulation) vs. the pure-f32 reference.
    if not jnp.allclose(logits, ref, atol=3e-2, rtol=3e-2):
        raise SystemExit("KERNEL_MISMATCH: max abs err = %e"
                         % float(jnp.max(jnp.abs(logits - ref))))
    print("KERNEL_OK")
</pallas_src>

<mosaic_0001>
module attributes {stable_mosaic.version = 11 : i64} {
  func.func @_attn_kernel(%arg0: i32, %arg1: memref<1x32x32xf32, #tpu.memory_space<vmem>>, %arg2: memref<1x32xf32, #tpu.memory_space<vmem>>, %arg3: memref<1x32xf32, #tpu.memory_space<vmem>>, %arg4: memref<32x32xbf16, #tpu.memory_space<vmem>>, %arg5: memref<32x32xbf16, #tpu.memory_space<vmem>>, %arg6: memref<32x32xbf16, #tpu.memory_space<vmem>>, %arg7: memref<32x32xbf16, #tpu.memory_space<vmem>>, %arg8: memref<32x8xf32, #tpu.memory_space<vmem>>, %arg9: memref<32x8xf32, #tpu.memory_space<vmem>>, %arg10: memref<1x32x32xf32, #tpu.memory_space<vmem>>, %arg11: memref<1x32x32xbf16, #tpu.memory_space<vmem>>, %arg12: memref<32x32xbf16, #tpu.memory_space<vmem>>, %arg13: memref<32x32xbf16, #tpu.memory_space<vmem>>, %arg14: memref<32x32xbf16, #tpu.memory_space<vmem>>, %arg15: memref<32x32xbf16, #tpu.memory_space<vmem>>) attributes {dimension_semantics = [#tpu.dimension_semantics<parallel>], iteration_bounds = array<i64: 2>, scalar_prefetch = 0 : i64, scratch_operands = 4 : i64, tpu.core_type = #tpu.core_type<tc>, window_params = [{transform_indices = @transform_0, window_bounds = array<i64: 1, 32, 32>}, {pipeline_mode = #tpu.pipeline_mode<synchronous>, transform_indices = @transform_1, window_bounds = array<i64: 1, 32>}, {pipeline_mode = #tpu.pipeline_mode<synchronous>, transform_indices = @transform_2, window_bounds = array<i64: 1, 32>}, {pipeline_mode = #tpu.pipeline_mode<synchronous>, transform_indices = @transform_3, window_bounds = array<i64: 32, 32>}, {pipeline_mode = #tpu.pipeline_mode<synchronous>, transform_indices = @transform_4, window_bounds = array<i64: 32, 32>}, {pipeline_mode = #tpu.pipeline_mode<synchronous>, transform_indices = @transform_5, window_bounds = array<i64: 32, 32>}, {pipeline_mode = #tpu.pipeline_mode<synchronous>, transform_indices = @transform_6, window_bounds = array<i64: 32, 32>}, {pipeline_mode = #tpu.pipeline_mode<synchronous>, transform_indices = @transform_7, window_bounds = array<i64: 32, 8>}, {pipeline_mode = #tpu.pipeline_mode<synchronous>, transform_indices = @transform_8, window_bounds = array<i64: 32, 8>}, {transform_indices = @transform_9, window_bounds = array<i64: 1, 32, 32>}, {transform_indices = @transform_10, window_bounds = array<i64: 1, 32, 32>}]} {
    %c0 = arith.constant 0 : index
    %c0_0 = arith.constant 0 : index
    %c0_1 = arith.constant 0 : index
    %0 = vector.load %arg1[%c0, %c0_0, %c0_1] : memref<1x32x32xf32, #tpu.memory_space<vmem>>, vector<1x32x32xf32>
    %1 = vector.shape_cast %0 : vector<1x32x32xf32> to vector<32x32xf32>
    %c0_2 = arith.constant 0 : index
    %c0_3 = arith.constant 0 : index
    %2 = vector.load %arg2[%c0_2, %c0_3] : memref<1x32xf32, #tpu.memory_space<vmem>>, vector<1x32xf32>
    %3 = arith.mulf %1, %1 : vector<32x32xf32>
    %cst = arith.constant dense<0.000000e+00> : vector<32xf32>
    %4 = vector.multi_reduction <add>, %3, %cst [1] : vector<32x32xf32> to vector<32xf32>
    %5 = vector.shape_cast %4 : vector<32xf32> to vector<32x1xf32>
    %cst_4 = arith.constant 3.200000e+01 : f32
    %6 = vector.broadcast %cst_4 : f32 to vector<32x1xf32>
    %7 = arith.divf %5, %6 : vector<32x1xf32>
    %cst_5 = arith.constant 9.99999997E-7 : f32
    %8 = vector.broadcast %cst_5 : f32 to vector<32x1xf32>
    %9 = arith.addf %7, %8 : vector<32x1xf32>
    %10 = math.rsqrt %9 : vector<32x1xf32>
    %11 = vector.broadcast %10 : vector<32x1xf32> to vector<32x32xf32>
    %12 = arith.mulf %1, %11 : vector<32x32xf32>
    %13 = vector.broadcast %2 : vector<1x32xf32> to vector<32x32xf32>
    %14 = arith.mulf %12, %13 : vector<32x32xf32>
    %15 = arith.truncf %14 : vector<32x32xf32> to vector<32x32xbf16>
    %c0_6 = arith.constant 0 : index
    %c0_7 = arith.constant 0 : index
    %16 = vector.load %arg4[%c0_6, %c0_7] : memref<32x32xbf16, #tpu.memory_space<vmem>>, vector<32x32xbf16>
    %cst_8 = arith.constant dense<0.000000e+00> : vector<32x32xf32>
    %17 = tpu.matmul %15, %16, %cst_8 {dimension_numbers = #tpu.dot_dimension_numbers<[1], [0], [0], [1], [0, 0, 1, 1], [], []>} : vector<32x32xbf16>, vector<32x32xbf16>, vector<32x32xf32> -> vector<32x32xf32>
    %c0_9 = arith.constant 0 : index
    %c0_10 = arith.constant 0 : index
    %18 = vector.load %arg5[%c0_9, %c0_10] : memref<32x32xbf16, #tpu.memory_space<vmem>>, vector<32x32xbf16>
    %cst_11 = arith.constant dense<0.000000e+00> : vector<32x32xf32>
    %19 = tpu.matmul %15, %18, %cst_11 {dimension_numbers = #tpu.dot_dimension_numbers<[1], [0], [0], [1], [0, 0, 1, 1], [], []>} : vector<32x32xbf16>, vector<32x32xbf16>, vector<32x32xf32> -> vector<32x32xf32>
    %c0_12 = arith.constant 0 : index
    %c0_13 = arith.constant 0 : index
    %20 = vector.load %arg8[%c0_12, %c0_13] : memref<32x8xf32, #tpu.memory_space<vmem>>, vector<32x8xf32>
    %c0_14 = arith.constant 0 : index
    %c0_15 = arith.constant 0 : index
    %21 = vector.load %arg9[%c0_14, %c0_15] : memref<32x8xf32, #tpu.memory_space<vmem>>, vector<32x8xf32>
    %22 = vector.extract_strided_slice %17 {offsets = [0, 0], sizes = [32, 8], strides = [1, 1]} : vector<32x32xf32> to vector<32x8xf32>
    %23 = arith.mulf %22, %20 : vector<32x8xf32>
    %24 = vector.extract_strided_slice %17 {offsets = [0, 0], sizes = [32, 8], strides = [1, 1]} : vector<32x32xf32> to vector<32x8xf32>
    %25 = vector.extract_strided_slice %24 {offsets = [0, 4], sizes = [32, 4], strides = [1, 1]} : vector<32x8xf32> to vector<32x4xf32>
    %26 = vector.extract_strided_slice %24 {offsets = [0, 0], sizes = [32, 4], strides = [1, 1]} : vector<32x8xf32> to vector<32x4xf32>
    %27 = tpu.concatenate %25, %26 in 1 : vector<32x4xf32>, vector<32x4xf32> -> vector<32x8xf32>
    %28 = arith.mulf %27, %21 : vector<32x8xf32>
    %29 = arith.addf %23, %28 : vector<32x8xf32>
    %30 = arith.truncf %29 : vector<32x8xf32> to vector<32x8xbf16>
    %c0_16 = arith.constant 0 : index
    %c0_17 = arith.constant 0 : index
    %31 = vector.load %arg12[%c0_16, %c0_17] : memref<32x32xbf16, #tpu.memory_space<vmem>>, vector<32x8xbf16>
    tpu.vector_store %arg12[%c0_16, %c0_17], %30 {strides = array<i32>} : memref<32x32xbf16, #tpu.memory_space<vmem>>, vector<32x8xbf16>,
    %32 = vector.extract_strided_slice %19 {offsets = [0, 0], sizes = [32, 8], strides = [1, 1]} : vector<32x32xf32> to vector<32x8xf32>
    %33 = arith.mulf %32, %20 : vector<32x8xf32>
    %34 = vector.extract_strided_slice %19 {offsets = [0, 0], sizes = [32, 8], strides = [1, 1]} : vector<32x32xf32> to vector<32x8xf32>
    %35 = vector.extract_strided_slice %34 {offsets = [0, 4], sizes = [32, 4], strides = [1, 1]} : vector<32x8xf32> to vector<32x4xf32>
    %36 = vector.extract_strided_slice %34 {offsets = [0, 0], sizes = [32, 4], strides = [1, 1]} : vector<32x8xf32> to vector<32x4xf32>
    %37 = tpu.concatenate %35, %36 in 1 : vector<32x4xf32>, vector<32x4xf32> -> vector<32x8xf32>
    %38 = arith.mulf %37, %21 : vector<32x8xf32>
    %39 = arith.addf %33, %38 : vector<32x8xf32>
    %40 = arith.truncf %39 : vector<32x8xf32> to vector<32x8xbf16>
    %c0_18 = arith.constant 0 : index
    %c0_19 = arith.constant 0 : index
    %41 = vector.load %arg13[%c0_18, %c0_19] : memref<32x32xbf16, #tpu.memory_space<vmem>>, vector<32x8xbf16>
    tpu.vector_store %arg13[%c0_18, %c0_19], %40 {strides = array<i32>} : memref<32x32xbf16, #tpu.memory_space<vmem>>, vector<32x8xbf16>,
    %42 = vector.extract_strided_slice %17 {offsets = [0, 8], sizes = [32, 8], strides = [1, 1]} : vector<32x32xf32> to vector<32x8xf32>
    %43 = arith.mulf %42, %20 : vector<32x8xf32>
    %44 = vector.extract_strided_slice %17 {offsets = [0, 8], sizes = [32, 8], strides = [1, 1]} : vector<32x32xf32> to vector<32x8xf32>
    %45 = vector.extract_strided_slice %44 {offsets = [0, 4], sizes = [32, 4], strides = [1, 1]} : vector<32x8xf32> to vector<32x4xf32>
    %46 = vector.extract_strided_slice %44 {offsets = [0, 0], sizes = [32, 4], strides = [1, 1]} : vector<32x8xf32> to vector<32x4xf32>
    %47 = tpu.concatenate %45, %46 in 1 : vector<32x4xf32>, vector<32x4xf32> -> vector<32x8xf32>
    %48 = arith.mulf %47, %21 : vector<32x8xf32>
    %49 = arith.addf %43, %48 : vector<32x8xf32>
    %50 = arith.truncf %49 : vector<32x8xf32> to vector<32x8xbf16>
    %c0_20 = arith.constant 0 : index
    %c8 = arith.constant 8 : index
    %51 = vector.load %arg12[%c0_20, %c8] : memref<32x32xbf16, #tpu.memory_space<vmem>>, vector<32x8xbf16>
    tpu.vector_store %arg12[%c0_20, %c8], %50 {strides = array<i32>} : memref<32x32xbf16, #tpu.memory_space<vmem>>, vector<32x8xbf16>,
    %52 = vector.extract_strided_slice %19 {offsets = [0, 8], sizes = [32, 8], strides = [1, 1]} : vector<32x32xf32> to vector<32x8xf32>
    %53 = arith.mulf %52, %20 : vector<32x8xf32>
    %54 = vector.extract_strided_slice %19 {offsets = [0, 8], sizes = [32, 8], strides = [1, 1]} : vector<32x32xf32> to vector<32x8xf32>
    %55 = vector.extract_strided_slice %54 {offsets = [0, 4], sizes = [32, 4], strides = [1, 1]} : vector<32x8xf32> to vector<32x4xf32>
    %56 = vector.extract_strided_slice %54 {offsets = [0, 0], sizes = [32, 4], strides = [1, 1]} : vector<32x8xf32> to vector<32x4xf32>
    %57 = tpu.concatenate %55, %56 in 1 : vector<32x4xf32>, vector<32x4xf32> -> vector<32x8xf32>
    %58 = arith.mulf %57, %21 : vector<32x8xf32>
    %59 = arith.addf %53, %58 : vector<32x8xf32>
    %60 = arith.truncf %59 : vector<32x8xf32> to vector<32x8xbf16>
    %c0_21 = arith.constant 0 : index
    %c8_22 = arith.constant 8 : index
    %61 = vector.load %arg13[%c0_21, %c8_22] : memref<32x32xbf16, #tpu.memory_space<vmem>>, vector<32x8xbf16>
    tpu.vector_store %arg13[%c0_21, %c8_22], %60 {strides = array<i32>} : memref<32x32xbf16, #tpu.memory_space<vmem>>, vector<32x8xbf16>,
    %62 = vector.extract_strided_slice %17 {offsets = [0, 16], sizes = [32, 8], strides = [1, 1]} : vector<32x32xf32> to vector<32x8xf32>
    %63 = arith.mulf %62, %20 : vector<32x8xf32>
    %64 = vector.extract_strided_slice %17 {offsets = [0, 16], sizes = [32, 8], strides = [1, 1]} : vector<32x32xf32> to vector<32x8xf32>
    %65 = vector.extract_strided_slice %64 {offsets = [0, 4], sizes = [32, 4], strides = [1, 1]} : vector<32x8xf32> to vector<32x4xf32>
    %66 = vector.extract_strided_slice %64 {offsets = [0, 0], sizes = [32, 4], strides = [1, 1]} : vector<32x8xf32> to vector<32x4xf32>
    %67 = tpu.concatenate %65, %66 in 1 : vector<32x4xf32>, vector<32x4xf32> -> vector<32x8xf32>
    %68 = arith.mulf %67, %21 : vector<32x8xf32>
    %69 = arith.addf %63, %68 : vector<32x8xf32>
    %70 = arith.truncf %69 : vector<32x8xf32> to vector<32x8xbf16>
    %c0_23 = arith.constant 0 : index
    %c16 = arith.constant 16 : index
    %71 = vector.load %arg12[%c0_23, %c16] : memref<32x32xbf16, #tpu.memory_space<vmem>>, vector<32x8xbf16>
    tpu.vector_store %arg12[%c0_23, %c16], %70 {strides = array<i32>} : memref<32x32xbf16, #tpu.memory_space<vmem>>, vector<32x8xbf16>,
    %72 = vector.extract_strided_slice %19 {offsets = [0, 16], sizes = [32, 8], strides = [1, 1]} : vector<32x32xf32> to vector<32x8xf32>
    %73 = arith.mulf %72, %20 : vector<32x8xf32>
    %74 = vector.extract_strided_slice %19 {offsets = [0, 16], sizes = [32, 8], strides = [1, 1]} : vector<32x32xf32> to vector<32x8xf32>
    %75 = vector.extract_strided_slice %74 {offsets = [0, 4], sizes = [32, 4], strides = [1, 1]} : vector<32x8xf32> to vector<32x4xf32>
    %76 = vector.extract_strided_slice %74 {offsets = [0, 0], sizes = [32, 4], strides = [1, 1]} : vector<32x8xf32> to vector<32x4xf32>
    %77 = tpu.concatenate %75, %76 in 1 : vector<32x4xf32>, vector<32x4xf32> -> vector<32x8xf32>
    %78 = arith.mulf %77, %21 : vector<32x8xf32>
    %79 = arith.addf %73, %78 : vector<32x8xf32>
    %80 = arith.truncf %79 : vector<32x8xf32> to vector<32x8xbf16>
    %c0_24 = arith.constant 0 : index
    %c16_25 = arith.constant 16 : index
    %81 = vector.load %arg13[%c0_24, %c16_25] : memref<32x32xbf16, #tpu.memory_space<vmem>>, vector<32x8xbf16>
    tpu.vector_store %arg13[%c0_24, %c16_25], %80 {strides = array<i32>} : memref<32x32xbf16, #tpu.memory_space<vmem>>, vector<32x8xbf16>,
    %82 = vector.extract_strided_slice %17 {offsets = [0, 24], sizes = [32, 8], strides = [1, 1]} : vector<32x32xf32> to vector<32x8xf32>
    %83 = arith.mulf %82, %20 : vector<32x8xf32>
    %84 = vector.extract_strided_slice %17 {offsets = [0, 24], sizes = [32, 8], strides = [1, 1]} : vector<32x32xf32> to vector<32x8xf32>
    %85 = vector.extract_strided_slice %84 {offsets = [0, 4], sizes = [32, 4], strides = [1, 1]} : vector<32x8xf32> to vector<32x4xf32>
    %86 = vector.extract_strided_slice %84 {offsets = [0, 0], sizes = [32, 4], strides = [1, 1]} : vector<32x8xf32> to vector<32x4xf32>
    %87 = tpu.concatenate %85, %86 in 1 : vector<32x4xf32>, vector<32x4xf32> -> vector<32x8xf32>
    %88 = arith.mulf %87, %21 : vector<32x8xf32>
    %89 = arith.addf %83, %88 : vector<32x8xf32>
    %90 = arith.truncf %89 : vector<32x8xf32> to vector<32x8xbf16>
    %c0_26 = arith.constant 0 : index
    %c24 = arith.constant 24 : index
    %91 = vector.load %arg12[%c0_26, %c24] : memref<32x32xbf16, #tpu.memory_space<vmem>>, vector<32x8xbf16>
    tpu.vector_store %arg12[%c0_26, %c24], %90 {strides = array<i32>} : memref<32x32xbf16, #tpu.memory_space<vmem>>, vector<32x8xbf16>,
    %92 = vector.extract_strided_slice %19 {offsets = [0, 24], sizes = [32, 8], strides = [1, 1]} : vector<32x32xf32> to vector<32x8xf32>
    %93 = arith.mulf %92, %20 : vector<32x8xf32>
    %94 = vector.extract_strided_slice %19 {offsets = [0, 24], sizes = [32, 8], strides = [1, 1]} : vector<32x32xf32> to vector<32x8xf32>
    %95 = vector.extract_strided_slice %94 {offsets = [0, 4], sizes = [32, 4], strides = [1, 1]} : vector<32x8xf32> to vector<32x4xf32>
    %96 = vector.extract_strided_slice %94 {offsets = [0, 0], sizes = [32, 4], strides = [1, 1]} : vector<32x8xf32> to vector<32x4xf32>
    %97 = tpu.concatenate %95, %96 in 1 : vector<32x4xf32>, vector<32x4xf32> -> vector<32x8xf32>
    %98 = arith.mulf %97, %21 : vector<32x8xf32>
    %99 = arith.addf %93, %98 : vector<32x8xf32>
    %100 = arith.truncf %99 : vector<32x8xf32> to vector<32x8xbf16>
    %c0_27 = arith.constant 0 : index
    %c24_28 = arith.constant 24 : index
    %101 = vector.load %arg13[%c0_27, %c24_28] : memref<32x32xbf16, #tpu.memory_space<vmem>>, vector<32x8xbf16>
    tpu.vector_store %arg13[%c0_27, %c24_28], %100 {strides = array<i32>} : memref<32x32xbf16, #tpu.memory_space<vmem>>, vector<32x8xbf16>,
    %c0_29 = arith.constant 0 : index
    %c0_30 = arith.constant 0 : index
    %102 = vector.load %arg6[%c0_29, %c0_30] : memref<32x32xbf16, #tpu.memory_space<vmem>>, vector<32x32xbf16>
    %cst_31 = arith.constant dense<0.000000e+00> : vector<32x32xf32>
    %103 = tpu.matmul %15, %102, %cst_31 {dimension_numbers = #tpu.dot_dimension_numbers<[1], [0], [0], [1], [0, 0, 1, 1], [], []>} : vector<32x32xbf16>, vector<32x32xbf16>, vector<32x32xf32> -> vector<32x32xf32>
    %104 = arith.truncf %103 : vector<32x32xf32> to vector<32x32xbf16>
    %c0_32 = arith.constant 0 : index
    %c0_33 = arith.constant 0 : index
    %105 = vector.load %arg14[%c0_32, %c0_33] : memref<32x32xbf16, #tpu.memory_space<vmem>>, vector<32x32xbf16>
    tpu.vector_store %arg14[%c0_32, %c0_33], %104 {strides = array<i32>} : memref<32x32xbf16, #tpu.memory_space<vmem>>, vector<32x32xbf16>,
    %106 = tpu.iota {dimensions = array<i32: 0>} : vector<32x16xi32>
    %107 = tpu.iota {dimensions = array<i32: 1>} : vector<32x16xi32>
    %c0_34 = arith.constant 0 : index
    %c0_35 = arith.constant 0 : index
    %108 = vector.load %arg12[%c0_34, %c0_35] : memref<32x32xbf16, #tpu.memory_space<vmem>>, vector<32x8xbf16>
    %cst_36 = arith.constant -1.000000e+30 : f32
    %109 = vector.broadcast %cst_36 : f32 to vector<32x1xf32>
    %cst_37 = arith.constant 0.000000e+00 : f32
    %110 = vector.broadcast %cst_37 : f32 to vector<32x1xf32>
    %cst_38 = arith.constant 0.000000e+00 : f32
    %111 = vector.broadcast %cst_38 : f32 to vector<32x8xf32>
    %c0_i32 = arith.constant 0 : i32
    %c2_i32 = arith.constant 2 : i32
    %112 = arith.addi %c0_i32, %c2_i32 : i32
    %c1_i32 = arith.constant 1 : i32
    %113:3 = scf.for %arg16 = %c0_i32 to %112 step %c1_i32 iter_args(%arg17 = %109, %arg18 = %110, %arg19 = %111) -> (vector<32x1xf32>, vector<32x1xf32>, vector<32x8xf32>)  : i32 {
      %c16_i32 = arith.constant 16 : i32
      %176 = arith.muli %arg16, %c16_i32 : i32
      %177 = tpu.assume_multiple %176, 16 : i32
      %178 = arith.index_cast %177 : i32 to index
      %c0_91 = arith.constant 0 : index
      %179 = vector.load %arg13[%178, %c0_91] : memref<32x32xbf16, #tpu.memory_space<vmem>>, vector<16x8xbf16>
      %180 = arith.index_cast %177 : i32 to index
      %c0_92 = arith.constant 0 : index
      %181 = vector.load %arg14[%180, %c0_92] : memref<32x32xbf16, #tpu.memory_space<vmem>>, vector<16x8xbf16>
      %cst_93 = arith.constant dense<0.000000e+00> : vector<32x16xf32>
      %182 = tpu.matmul %108, %179, %cst_93 {dimension_numbers = #tpu.dot_dimension_numbers<[1], [1], [0], [0], [0, 0, 1, 0], [], []>} : vector<32x8xbf16>, vector<16x8xbf16>, vector<32x16xf32> -> vector<32x16xf32>
      %c16_i32_94 = arith.constant 16 : i32
      %183 = arith.muli %arg16, %c16_i32_94 : i32
      %184 = vector.broadcast %183 : i32 to vector<32x16xi32>
      %185 = arith.addi %107, %184 : vector<32x16xi32>
      %186 = arith.cmpi sge, %106, %185 : vector<32x16xi32>
      %cst_95 = arith.constant -1.000000e+30 : f32
      %187 = vector.broadcast %cst_95 : f32 to vector<32x16xf32>
      %188 = arith.select %186, %182, %187 : vector<32x16xi1>, vector<32x16xf32>
      %cst_96 = arith.constant dense<0xFF800000> : vector<32xf32>
      %189 = vector.multi_reduction <maximumf>, %188, %cst_96 [1] : vector<32x16xf32> to vector<32xf32>
      %190 = vector.shape_cast %189 : vector<32xf32> to vector<32x1xf32>
      %191 = arith.maximumf %arg17, %190 : vector<32x1xf32>
      %192 = arith.subf %arg17, %191 : vector<32x1xf32>
      %193 = math.exp %192 : vector<32x1xf32>
      %194 = vector.broadcast %191 : vector<32x1xf32> to vector<32x16xf32>
      %195 = arith.subf %188, %194 : vector<32x16xf32>
      %196 = math.exp %195 : vector<32x16xf32>
      %197 = arith.mulf %193, %arg18 : vector<32x1xf32>
      %cst_97 = arith.constant dense<0.000000e+00> : vector<32xf32>
      %198 = vector.multi_reduction <add>, %196, %cst_97 [1] : vector<32x16xf32> to vector<32xf32>
      %199 = vector.shape_cast %198 : vector<32xf32> to vector<32x1xf32>
      %200 = arith.addf %197, %199 : vector<32x1xf32>
      %201 = vector.broadcast %193 : vector<32x1xf32> to vector<32x8xf32>
      %202 = arith.mulf %201, %arg19 : vector<32x8xf32>
      %203 = arith.truncf %196 : vector<32x16xf32> to vector<32x16xbf16>
      %cst_98 = arith.constant dense<0.000000e+00> : vector<32x8xf32>
      %204 = tpu.matmul %203, %181, %cst_98 {dimension_numbers = #tpu.dot_dimension_numbers<[1], [0], [0], [1], [0, 0, 1, 1], [], []>} : vector<32x16xbf16>, vector<16x8xbf16>, vector<32x8xf32> -> vector<32x8xf32>
      %205 = arith.addf %202, %204 : vector<32x8xf32>
      scf.yield %191, %200, %205 : vector<32x1xf32>, vector<32x1xf32>, vector<32x8xf32>
    }
    %c2_i32_39 = arith.constant 2 : i32
    %114 = tpu.reciprocal %113#1 {approx = true} : vector<32x1xf32> -> vector<32x1xf32>
    %115 = vector.broadcast %114 : vector<32x1xf32> to vector<32x8xf32>
    %116 = arith.mulf %113#2, %115 : vector<32x8xf32>
    %117 = arith.truncf %116 : vector<32x8xf32> to vector<32x8xbf16>
    %c0_40 = arith.constant 0 : index
    %c0_41 = arith.constant 0 : index
    %118 = vector.load %arg15[%c0_40, %c0_41] : memref<32x32xbf16, #tpu.memory_space<vmem>>, vector<32x8xbf16>
    tpu.vector_store %arg15[%c0_40, %c0_41], %117 {strides = array<i32>} : memref<32x32xbf16, #tpu.memory_space<vmem>>, vector<32x8xbf16>,
    %c0_42 = arith.constant 0 : index
    %c8_43 = arith.constant 8 : index
    %119 = vector.load %arg12[%c0_42, %c8_43] : memref<32x32xbf16, #tpu.memory_space<vmem>>, vector<32x8xbf16>
    %cst_44 = arith.constant -1.000000e+30 : f32
    %120 = vector.broadcast %cst_44 : f32 to vector<32x1xf32>
    %cst_45 = arith.constant 0.000000e+00 : f32
    %121 = vector.broadcast %cst_45 : f32 to vector<32x1xf32>
    %cst_46 = arith.constant 0.000000e+00 : f32
    %122 = vector.broadcast %cst_46 : f32 to vector<32x8xf32>
    %c0_i32_47 = arith.constant 0 : i32
    %c2_i32_48 = arith.constant 2 : i32
    %123 = arith.addi %c0_i32_47, %c2_i32_48 : i32
    %c1_i32_49 = arith.constant 1 : i32
    %124:3 = scf.for %arg16 = %c0_i32_47 to %123 step %c1_i32_49 iter_args(%arg17 = %120, %arg18 = %121, %arg19 = %122) -> (vector<32x1xf32>, vector<32x1xf32>, vector<32x8xf32>)  : i32 {
      %c16_i32 = arith.constant 16 : i32
      %176 = arith.muli %arg16, %c16_i32 : i32
      %177 = tpu.assume_multiple %176, 16 : i32
      %178 = arith.index_cast %177 : i32 to index
      %c8_91 = arith.constant 8 : index
      %179 = vector.load %arg13[%178, %c8_91] : memref<32x32xbf16, #tpu.memory_space<vmem>>, vector<16x8xbf16>
      %180 = arith.index_cast %177 : i32 to index
      %c8_92 = arith.constant 8 : index
      %181 = vector.load %arg14[%180, %c8_92] : memref<32x32xbf16, #tpu.memory_space<vmem>>, vector<16x8xbf16>
      %cst_93 = arith.constant dense<0.000000e+00> : vector<32x16xf32>
      %182 = tpu.matmul %119, %179, %cst_93 {dimension_numbers = #tpu.dot_dimension_numbers<[1], [1], [0], [0], [0, 0, 1, 0], [], []>} : vector<32x8xbf16>, vector<16x8xbf16>, vector<32x16xf32> -> vector<32x16xf32>
      %c16_i32_94 = arith.constant 16 : i32
      %183 = arith.muli %arg16, %c16_i32_94 : i32
      %184 = vector.broadcast %183 : i32 to vector<32x16xi32>
      %185 = arith.addi %107, %184 : vector<32x16xi32>
      %186 = arith.cmpi sge, %106, %185 : vector<32x16xi32>
      %cst_95 = arith.constant -1.000000e+30 : f32
      %187 = vector.broadcast %cst_95 : f32 to vector<32x16xf32>
      %188 = arith.select %186, %182, %187 : vector<32x16xi1>, vector<32x16xf32>
      %cst_96 = arith.constant dense<0xFF800000> : vector<32xf32>
      %189 = vector.multi_reduction <maximumf>, %188, %cst_96 [1] : vector<32x16xf32> to vector<32xf32>
      %190 = vector.shape_cast %189 : vector<32xf32> to vector<32x1xf32>
      %191 = arith.maximumf %arg17, %190 : vector<32x1xf32>
      %192 = arith.subf %arg17, %191 : vector<32x1xf32>
      %193 = math.exp %192 : vector<32x1xf32>
      %194 = vector.broadcast %191 : vector<32x1xf32> to vector<32x16xf32>
      %195 = arith.subf %188, %194 : vector<32x16xf32>
      %196 = math.exp %195 : vector<32x16xf32>
      %197 = arith.mulf %193, %arg18 : vector<32x1xf32>
      %cst_97 = arith.constant dense<0.000000e+00> : vector<32xf32>
      %198 = vector.multi_reduction <add>, %196, %cst_97 [1] : vector<32x16xf32> to vector<32xf32>
      %199 = vector.shape_cast %198 : vector<32xf32> to vector<32x1xf32>
      %200 = arith.addf %197, %199 : vector<32x1xf32>
      %201 = vector.broadcast %193 : vector<32x1xf32> to vector<32x8xf32>
      %202 = arith.mulf %201, %arg19 : vector<32x8xf32>
      %203 = arith.truncf %196 : vector<32x16xf32> to vector<32x16xbf16>
      %cst_98 = arith.constant dense<0.000000e+00> : vector<32x8xf32>
      %204 = tpu.matmul %203, %181, %cst_98 {dimension_numbers = #tpu.dot_dimension_numbers<[1], [0], [0], [1], [0, 0, 1, 1], [], []>} : vector<32x16xbf16>, vector<16x8xbf16>, vector<32x8xf32> -> vector<32x8xf32>
      %205 = arith.addf %202, %204 : vector<32x8xf32>
      scf.yield %191, %200, %205 : vector<32x1xf32>, vector<32x1xf32>, vector<32x8xf32>
    }
    %c2_i32_50 = arith.constant 2 : i32
    %125 = tpu.reciprocal %124#1 {approx = true} : vector<32x1xf32> -> vector<32x1xf32>
    %126 = vector.broadcast %125 : vector<32x1xf32> to vector<32x8xf32>
    %127 = arith.mulf %124#2, %126 : vector<32x8xf32>
    %128 = arith.truncf %127 : vector<32x8xf32> to vector<32x8xbf16>
    %c0_51 = arith.constant 0 : index
    %c8_52 = arith.constant 8 : index
    %129 = vector.load %arg15[%c0_51, %c8_52] : memref<32x32xbf16, #tpu.memory_space<vmem>>, vector<32x8xbf16>
    tpu.vector_store %arg15[%c0_51, %c8_52], %128 {strides = array<i32>} : memref<32x32xbf16, #tpu.memory_space<vmem>>, vector<32x8xbf16>,
    %c0_53 = arith.constant 0 : index
    %c16_54 = arith.constant 16 : index
    %130 = vector.load %arg12[%c0_53, %c16_54] : memref<32x32xbf16, #tpu.memory_space<vmem>>, vector<32x8xbf16>
    %cst_55 = arith.constant -1.000000e+30 : f32
    %131 = vector.broadcast %cst_55 : f32 to vector<32x1xf32>
    %cst_56 = arith.constant 0.000000e+00 : f32
    %132 = vector.broadcast %cst_56 : f32 to vector<32x1xf32>
    %cst_57 = arith.constant 0.000000e+00 : f32
    %133 = vector.broadcast %cst_57 : f32 to vector<32x8xf32>
    %c0_i32_58 = arith.constant 0 : i32
    %c2_i32_59 = arith.constant 2 : i32
    %134 = arith.addi %c0_i32_58, %c2_i32_59 : i32
    %c1_i32_60 = arith.constant 1 : i32
    %135:3 = scf.for %arg16 = %c0_i32_58 to %134 step %c1_i32_60 iter_args(%arg17 = %131, %arg18 = %132, %arg19 = %133) -> (vector<32x1xf32>, vector<32x1xf32>, vector<32x8xf32>)  : i32 {
      %c16_i32 = arith.constant 16 : i32
      %176 = arith.muli %arg16, %c16_i32 : i32
      %177 = tpu.assume_multiple %176, 16 : i32
      %178 = arith.index_cast %177 : i32 to index
      %c16_91 = arith.constant 16 : index
      %179 = vector.load %arg13[%178, %c16_91] : memref<32x32xbf16, #tpu.memory_space<vmem>>, vector<16x8xbf16>
      %180 = arith.index_cast %177 : i32 to index
      %c16_92 = arith.constant 16 : index
      %181 = vector.load %arg14[%180, %c16_92] : memref<32x32xbf16, #tpu.memory_space<vmem>>, vector<16x8xbf16>
      %cst_93 = arith.constant dense<0.000000e+00> : vector<32x16xf32>
      %182 = tpu.matmul %130, %179, %cst_93 {dimension_numbers = #tpu.dot_dimension_numbers<[1], [1], [0], [0], [0, 0, 1, 0], [], []>} : vector<32x8xbf16>, vector<16x8xbf16>, vector<32x16xf32> -> vector<32x16xf32>
      %c16_i32_94 = arith.constant 16 : i32
      %183 = arith.muli %arg16, %c16_i32_94 : i32
      %184 = vector.broadcast %183 : i32 to vector<32x16xi32>
      %185 = arith.addi %107, %184 : vector<32x16xi32>
      %186 = arith.cmpi sge, %106, %185 : vector<32x16xi32>
      %cst_95 = arith.constant -1.000000e+30 : f32
      %187 = vector.broadcast %cst_95 : f32 to vector<32x16xf32>
      %188 = arith.select %186, %182, %187 : vector<32x16xi1>, vector<32x16xf32>
      %cst_96 = arith.constant dense<0xFF800000> : vector<32xf32>
      %189 = vector.multi_reduction <maximumf>, %188, %cst_96 [1] : vector<32x16xf32> to vector<32xf32>
      %190 = vector.shape_cast %189 : vector<32xf32> to vector<32x1xf32>
      %191 = arith.maximumf %arg17, %190 : vector<32x1xf32>
      %192 = arith.subf %arg17, %191 : vector<32x1xf32>
      %193 = math.exp %192 : vector<32x1xf32>
      %194 = vector.broadcast %191 : vector<32x1xf32> to vector<32x16xf32>
      %195 = arith.subf %188, %194 : vector<32x16xf32>
      %196 = math.exp %195 : vector<32x16xf32>
      %197 = arith.mulf %193, %arg18 : vector<32x1xf32>
      %cst_97 = arith.constant dense<0.000000e+00> : vector<32xf32>
      %198 = vector.multi_reduction <add>, %196, %cst_97 [1] : vector<32x16xf32> to vector<32xf32>
      %199 = vector.shape_cast %198 : vector<32xf32> to vector<32x1xf32>
      %200 = arith.addf %197, %199 : vector<32x1xf32>
      %201 = vector.broadcast %193 : vector<32x1xf32> to vector<32x8xf32>
      %202 = arith.mulf %201, %arg19 : vector<32x8xf32>
      %203 = arith.truncf %196 : vector<32x16xf32> to vector<32x16xbf16>
      %cst_98 = arith.constant dense<0.000000e+00> : vector<32x8xf32>
      %204 = tpu.matmul %203, %181, %cst_98 {dimension_numbers = #tpu.dot_dimension_numbers<[1], [0], [0], [1], [0, 0, 1, 1], [], []>} : vector<32x16xbf16>, vector<16x8xbf16>, vector<32x8xf32> -> vector<32x8xf32>
      %205 = arith.addf %202, %204 : vector<32x8xf32>
      scf.yield %191, %200, %205 : vector<32x1xf32>, vector<32x1xf32>, vector<32x8xf32>
    }
    %c2_i32_61 = arith.constant 2 : i32
    %136 = tpu.reciprocal %135#1 {approx = true} : vector<32x1xf32> -> vector<32x1xf32>
    %137 = vector.broadcast %136 : vector<32x1xf32> to vector<32x8xf32>
    %138 = arith.mulf %135#2, %137 : vector<32x8xf32>
    %139 = arith.truncf %138 : vector<32x8xf32> to vector<32x8xbf16>
    %c0_62 = arith.constant 0 : index
    %c16_63 = arith.constant 16 : index
    %140 = vector.load %arg15[%c0_62, %c16_63] : memref<32x32xbf16, #tpu.memory_space<vmem>>, vector<32x8xbf16>
    tpu.vector_store %arg15[%c0_62, %c16_63], %139 {strides = array<i32>} : memref<32x32xbf16, #tpu.memory_space<vmem>>, vector<32x8xbf16>,
    %c0_64 = arith.constant 0 : index
    %c24_65 = arith.constant 24 : index
    %141 = vector.load %arg12[%c0_64, %c24_65] : memref<32x32xbf16, #tpu.memory_space<vmem>>, vector<32x8xbf16>
    %cst_66 = arith.constant -1.000000e+30 : f32
    %142 = vector.broadcast %cst_66 : f32 to vector<32x1xf32>
    %cst_67 = arith.constant 0.000000e+00 : f32
    %143 = vector.broadcast %cst_67 : f32 to vector<32x1xf32>
    %cst_68 = arith.constant 0.000000e+00 : f32
    %144 = vector.broadcast %cst_68 : f32 to vector<32x8xf32>
    %c0_i32_69 = arith.constant 0 : i32
    %c2_i32_70 = arith.constant 2 : i32
    %145 = arith.addi %c0_i32_69, %c2_i32_70 : i32
    %c1_i32_71 = arith.constant 1 : i32
    %146:3 = scf.for %arg16 = %c0_i32_69 to %145 step %c1_i32_71 iter_args(%arg17 = %142, %arg18 = %143, %arg19 = %144) -> (vector<32x1xf32>, vector<32x1xf32>, vector<32x8xf32>)  : i32 {
      %c16_i32 = arith.constant 16 : i32
      %176 = arith.muli %arg16, %c16_i32 : i32
      %177 = tpu.assume_multiple %176, 16 : i32
      %178 = arith.index_cast %177 : i32 to index
      %c24_91 = arith.constant 24 : index
      %179 = vector.load %arg13[%178, %c24_91] : memref<32x32xbf16, #tpu.memory_space<vmem>>, vector<16x8xbf16>
      %180 = arith.index_cast %177 : i32 to index
      %c24_92 = arith.constant 24 : index
      %181 = vector.load %arg14[%180, %c24_92] : memref<32x32xbf16, #tpu.memory_space<vmem>>, vector<16x8xbf16>
      %cst_93 = arith.constant dense<0.000000e+00> : vector<32x16xf32>
      %182 = tpu.matmul %141, %179, %cst_93 {dimension_numbers = #tpu.dot_dimension_numbers<[1], [1], [0], [0], [0, 0, 1, 0], [], []>} : vector<32x8xbf16>, vector<16x8xbf16>, vector<32x16xf32> -> vector<32x16xf32>
      %c16_i32_94 = arith.constant 16 : i32
      %183 = arith.muli %arg16, %c16_i32_94 : i32
      %184 = vector.broadcast %183 : i32 to vector<32x16xi32>
      %185 = arith.addi %107, %184 : vector<32x16xi32>
      %186 = arith.cmpi sge, %106, %185 : vector<32x16xi32>
      %cst_95 = arith.constant -1.000000e+30 : f32
      %187 = vector.broadcast %cst_95 : f32 to vector<32x16xf32>
      %188 = arith.select %186, %182, %187 : vector<32x16xi1>, vector<32x16xf32>
      %cst_96 = arith.constant dense<0xFF800000> : vector<32xf32>
      %189 = vector.multi_reduction <maximumf>, %188, %cst_96 [1] : vector<32x16xf32> to vector<32xf32>
      %190 = vector.shape_cast %189 : vector<32xf32> to vector<32x1xf32>
      %191 = arith.maximumf %arg17, %190 : vector<32x1xf32>
      %192 = arith.subf %arg17, %191 : vector<32x1xf32>
      %193 = math.exp %192 : vector<32x1xf32>
      %194 = vector.broadcast %191 : vector<32x1xf32> to vector<32x16xf32>
      %195 = arith.subf %188, %194 : vector<32x16xf32>
      %196 = math.exp %195 : vector<32x16xf32>
      %197 = arith.mulf %193, %arg18 : vector<32x1xf32>
      %cst_97 = arith.constant dense<0.000000e+00> : vector<32xf32>
      %198 = vector.multi_reduction <add>, %196, %cst_97 [1] : vector<32x16xf32> to vector<32xf32>
      %199 = vector.shape_cast %198 : vector<32xf32> to vector<32x1xf32>
      %200 = arith.addf %197, %199 : vector<32x1xf32>
      %201 = vector.broadcast %193 : vector<32x1xf32> to vector<32x8xf32>
      %202 = arith.mulf %201, %arg19 : vector<32x8xf32>
      %203 = arith.truncf %196 : vector<32x16xf32> to vector<32x16xbf16>
      %cst_98 = arith.constant dense<0.000000e+00> : vector<32x8xf32>
      %204 = tpu.matmul %203, %181, %cst_98 {dimension_numbers = #tpu.dot_dimension_numbers<[1], [0], [0], [1], [0, 0, 1, 1], [], []>} : vector<32x16xbf16>, vector<16x8xbf16>, vector<32x8xf32> -> vector<32x8xf32>
      %205 = arith.addf %202, %204 : vector<32x8xf32>
      scf.yield %191, %200, %205 : vector<32x1xf32>, vector<32x1xf32>, vector<32x8xf32>
    }
    %c2_i32_72 = arith.constant 2 : i32
    %147 = tpu.reciprocal %146#1 {approx = true} : vector<32x1xf32> -> vector<32x1xf32>
    %148 = vector.broadcast %147 : vector<32x1xf32> to vector<32x8xf32>
    %149 = arith.mulf %146#2, %148 : vector<32x8xf32>
    %150 = arith.truncf %149 : vector<32x8xf32> to vector<32x8xbf16>
    %c0_73 = arith.constant 0 : index
    %c24_74 = arith.constant 24 : index
    %151 = vector.load %arg15[%c0_73, %c24_74] : memref<32x32xbf16, #tpu.memory_space<vmem>>, vector<32x8xbf16>
    tpu.vector_store %arg15[%c0_73, %c24_74], %150 {strides = array<i32>} : memref<32x32xbf16, #tpu.memory_space<vmem>>, vector<32x8xbf16>,
    %c0_75 = arith.constant 0 : index
    %c0_76 = arith.constant 0 : index
    %152 = vector.load %arg15[%c0_75, %c0_76] : memref<32x32xbf16, #tpu.memory_space<vmem>>, vector<32x32xbf16>
    %c0_77 = arith.constant 0 : index
    %c0_78 = arith.constant 0 : index
    %153 = vector.load %arg7[%c0_77, %c0_78] : memref<32x32xbf16, #tpu.memory_space<vmem>>, vector<32x32xbf16>
    %cst_79 = arith.constant dense<0.000000e+00> : vector<32x32xf32>
    %154 = tpu.matmul %152, %153, %cst_79 {dimension_numbers = #tpu.dot_dimension_numbers<[1], [0], [0], [1], [0, 0, 1, 1], [], []>} : vector<32x32xbf16>, vector<32x32xbf16>, vector<32x32xf32> -> vector<32x32xf32>
    %155 = arith.addf %1, %154 : vector<32x32xf32>
    %c0_80 = arith.constant 0 : index
    %c0_81 = arith.constant 0 : index
    %c0_82 = arith.constant 0 : index
    %156 = vector.load %arg10[%c0_80, %c0_81, %c0_82] : memref<1x32x32xf32, #tpu.memory_space<vmem>>, vector<1x32x32xf32>
    %157 = vector.shape_cast %156 : vector<1x32x32xf32> to vector<32x32xf32>
    %158 = vector.shape_cast %155 : vector<32x32xf32> to vector<1x32x32xf32>
    tpu.vector_store %arg10[%c0_80, %c0_81, %c0_82], %158 {strides = array<i32>} : memref<1x32x32xf32, #tpu.memory_space<vmem>>, vector<1x32x32xf32>,
    %c0_83 = arith.constant 0 : index
    %c0_84 = arith.constant 0 : index
    %159 = vector.load %arg3[%c0_83, %c0_84] : memref<1x32xf32, #tpu.memory_space<vmem>>, vector<1x32xf32>
    %160 = arith.mulf %155, %155 : vector<32x32xf32>
    %cst_85 = arith.constant dense<0.000000e+00> : vector<32xf32>
    %161 = vector.multi_reduction <add>, %160, %cst_85 [1] : vector<32x32xf32> to vector<32xf32>
    %162 = vector.shape_cast %161 : vector<32xf32> to vector<32x1xf32>
    %cst_86 = arith.constant 3.200000e+01 : f32
    %163 = vector.broadcast %cst_86 : f32 to vector<32x1xf32>
    %164 = arith.divf %162, %163 : vector<32x1xf32>
    %cst_87 = arith.constant 9.99999997E-7 : f32
    %165 = vector.broadcast %cst_87 : f32 to vector<32x1xf32>
    %166 = arith.addf %164, %165 : vector<32x1xf32>
    %167 = math.rsqrt %166 : vector<32x1xf32>
    %168 = vector.broadcast %167 : vector<32x1xf32> to vector<32x32xf32>
    %169 = arith.mulf %155, %168 : vector<32x32xf32>
    %170 = vector.broadcast %159 : vector<1x32xf32> to vector<32x32xf32>
    %171 = arith.mulf %169, %170 : vector<32x32xf32>
    %172 = arith.truncf %171 : vector<32x32xf32> to vector<32x32xbf16>
    %c0_88 = arith.constant 0 : index
    %c0_89 = arith.constant 0 : index
    %c0_90 = arith.constant 0 : index
    %173 = vector.load %arg11[%c0_88, %c0_89, %c0_90] : memref<1x32x32xbf16, #tpu.memory_space<vmem>>, vector<1x32x32xbf16>
    %174 = vector.shape_cast %173 : vector<1x32x32xbf16> to vector<32x32xbf16>
    %175 = vector.shape_cast %172 : vector<32x32xbf16> to vector<1x32x32xbf16>
    tpu.vector_store %arg11[%c0_88, %c0_89, %c0_90], %175 {strides = array<i32>} : memref<1x32x32xbf16, #tpu.memory_space<vmem>>, vector<1x32x32xbf16>,
    return
  }
  func.func @transform_0(%arg0: i32) -> (i32, i32, i32) {
    %c0_i32 = arith.constant 0 : i32
    %c0_i32_0 = arith.constant 0 : i32
    %c0_i32_1 = arith.constant 0 : i32
    return %arg0, %c0_i32, %c0_i32_0 : i32, i32, i32
  }
  func.func @transform_1(%arg0: i32) -> (i32, i32) {
    %c0_i32 = arith.constant 0 : i32
    %c0_i32_0 = arith.constant 0 : i32
    %c0_i32_1 = arith.constant 0 : i32
    return %c0_i32, %c0_i32_0 : i32, i32
  }
  func.func @transform_2(%arg0: i32) -> (i32, i32) {
    %c0_i32 = arith.constant 0 : i32
    %c0_i32_0 = arith.constant 0 : i32
    %c0_i32_1 = arith.constant 0 : i32
    return %c0_i32, %c0_i32_0 : i32, i32
  }
  func.func @transform_3(%arg0: i32) -> (i32, i32) {
    %c0_i32 = arith.constant 0 : i32
    %c0_i32_0 = arith.constant 0 : i32
    %c0_i32_1 = arith.constant 0 : i32
    return %c0_i32, %c0_i32_0 : i32, i32
  }
  func.func @transform_4(%arg0: i32) -> (i32, i32) {
    %c0_i32 = arith.constant 0 : i32
    %c0_i32_0 = arith.constant 0 : i32
    %c0_i32_1 = arith.constant 0 : i32
    return %c0_i32, %c0_i32_0 : i32, i32
  }
  func.func @transform_5(%arg0: i32) -> (i32, i32) {
    %c0_i32 = arith.constant 0 : i32
    %c0_i32_0 = arith.constant 0 : i32
    %c0_i32_1 = arith.constant 0 : i32
    return %c0_i32, %c0_i32_0 : i32, i32
  }
  func.func @transform_6(%arg0: i32) -> (i32, i32) {
    %c0_i32 = arith.constant 0 : i32
    %c0_i32_0 = arith.constant 0 : i32
    %c0_i32_1 = arith.constant 0 : i32
    return %c0_i32, %c0_i32_0 : i32, i32
  }
  func.func @transform_7(%arg0: i32) -> (i32, i32) {
    %c0_i32 = arith.constant 0 : i32
    %c0_i32_0 = arith.constant 0 : i32
    %c0_i32_1 = arith.constant 0 : i32
    return %c0_i32, %c0_i32_0 : i32, i32
  }
  func.func @transform_8(%arg0: i32) -> (i32, i32) {
    %c0_i32 = arith.constant 0 : i32
    %c0_i32_0 = arith.constant 0 : i32
    %c0_i32_1 = arith.constant 0 : i32
    return %c0_i32, %c0_i32_0 : i32, i32
  }
  func.func @transform_9(%arg0: i32) -> (i32, i32, i32) {
    %c0_i32 = arith.constant 0 : i32
    %c0_i32_0 = arith.constant 0 : i32
    %c0_i32_1 = arith.constant 0 : i32
    return %arg0, %c0_i32, %c0_i32_0 : i32, i32, i32
  }
  func.func @transform_10(%arg0: i32) -> (i32, i32, i32) {
    %c0_i32 = arith.constant 0 : i32
    %c0_i32_0 = arith.constant 0 : i32
    %c0_i32_1 = arith.constant 0 : i32
    return %arg0, %c0_i32, %c0_i32_0 : i32, i32, i32
  }
}

</mosaic_0001>

<bundles_post_ra>
// kernel: tpu_custom_call.1
= control target key start
LH: loop header
LB: loop body
LE: loop exit
PB: predicated region body
PF: predicated region fallthrough
CT: control target
= control target key end

     0   :  { %16 = vsyncpa [#allocation7], 0  ;;  %s5445_s0 = inlined_call_operand.vmem [shape: f32[2,32,32], index: 0, kind: input, shape index: {}]   ;;  %s5446_s1 = inlined_call_operand.vmem [shape: f32[1,32], index: 1, kind: input, shape index: {}]   ;;  %s5447_s2 = inlined_call_operand.vmem [shape: f32[1,32], index: 2, kind: input, shape index: {}]   ;;  %s5448_s3 = inlined_call_operand.vmem [shape: bf16[32,32], index: 3, kind: input, shape index: {}]   ;;  %s5449_s4 = inlined_call_operand.hbm [shape: bf16[32,32], index: 4, kind: input, shape index: {}]   ;;  %s5450_s5 = inlined_call_operand.vmem [shape: bf16[32,32], index: 5, kind: input, shape index: {}]   ;;  %s5451_s6 = inlined_call_operand.hbm [shape: bf16[32,32], index: 6, kind: input, shape index: {}]   ;;  %s5452_s7 = inlined_call_operand.vmem [shape: f32[32,8], index: 7, kind: input, shape index: {}]   ;;  %s5453_s8 = inlined_call_operand.vmem [shape: f32[32,8], index: 8, kind: input, shape index: {}]   ;;  %s5454_s9 = inlined_call_operand.hbm [shape: f32[2,32,32], index: 9, kind: output, shape index: {0}]   ;;  %s5455_s10 = inlined_call_operand.hbm [shape: bf16[2,32,32], index: 10, kind: output, shape index: {1}]  }
   0x1   :  { %17 = vsyncpa [#allocation10], 0 }
   0x2   :  { %18 = vsyncpa [#allocation8], 0 }
   0x3   :  { %20 = vsyncpa [#allocation8 + $0x1], 0 }
   0x4   :  { %21 = vsyncpa [#allocation13], 0 }
   0x5   :  { %23 = vsyncpa [#allocation13 + $0x1], 0  ;;  %s4046_s13 = smov 0   ;;  %s4048_s14 = smov 0  }
   0x6   :  { %s4050_s15 = smov 0   ;;  %s4052_s16 = smov 0  }
   0x7 LB: > { %5463 = sst [smem:[#allocation18_spill]] %s3758_s15  ;;  %s4067_s17 = sadd.s32 4294967295, %s3762_s16   ;;  %s3762_s16 = sphi %s4052_s16, %s5531_s16   ;;  %s3758_s15 = sphi %s4050_s15, %s5533_s15   ;;  %s3754_s14 = sphi %s4048_s14, %s5535_s14   ;;  %s3750_s13 = sphi %s4046_s13, %s5534_s13  }
   0x8   : > { %s2579_s18 = sadd.s32 4294967294, %s3762_s16   ;;  %s4071_s19 = sadd.s32 1, %s3762_s16  }
   0x9   : > { %5464 = sst [smem:[#allocation19_spill]] %s4071_s19  ;;  %s230_s20 = sadd.s32 1, %s3758_s15 }
   0xa   : > { %s227_s21 = ssub.s32 %s3762_s16, %s4071_s19  ;;  %p240_p0 = scmp.ne.s32.totalorder %s3758_s15, %s3754_s14 }
   0xb   : > { %p228_p1 = scmp.eq.s32.totalorder %s227_s21, 0  ;;  %p241_p2 = scmp.eq.s32.totalorder %s4067_s17, 1 }
   0xc   : > { %p246_p3 = scmp.ne.s32.totalorder %s3754_s14, %s3750_s13  ;;  %p247_p4 = scmp.eq.s32.totalorder %s2579_s18, 1 }
   0xd   : > { %s4082_s22 = scalar_select %p228_p1, %s3758_s15, %s230_s20  }
   0xe   : > { %p4084_p5 = por %p241_p2, %p240_p0  ;;  %p4088_p6 = por %p247_p4, %p246_p3 }
   0xf   : > { %5465 = sst [smem:[#allocation20_spill]] %s4082_s22  ;;  %p2580_p7 = scmp.ge.s32.totalorder %s3762_s16, 1 }
  0x10   : > { %s5466_s23 = scalar_select %p4084_p5, 1, 0 }
  0x11   : > { %s5467_s24 = scalar_select %p4088_p6, 1, 0 }
  0x12   : > { %p280_p8 = scmp.lt.s32.totalorder %s3762_s16, 3  ;;  %p5456_p9 = scmp.eq.s32.totalorder %s4067_s17, 0 }
  0x13   : > { %5468 = sst [smem:[#allocation21_spill]] %s5467_s24  ;;  %s3972_s26 = smov [#allocation6]  }
  0x14   : > { %p4095_p10 = pnand %p2580_p7, %p280_p8  ;;  %s301_s27 = sshll.u32 %s3972_s26, 4  ;;  %s302_s27 = int_to_ptr.vmem [resolvable:$true] %s301_s27 }
  0x15   : > { %s3973_s29 = smov [#allocation9]   ;;  %s3396_s18 = scalar_lea.hbm %s5449_s4, 256 }
  0x16   : > { %s5469_s25 = scalar_select %p4095_p10, 1, 0 }
  0x17   : > { %p2792_p11 = pneg %p4095_p10  ;;  %s317_s30 = sshll.u32 %s3973_s29, 4  ;;  %s4107_s30 = int_to_ptr.vmem [resolvable:$true] %s317_s30 }
  0x18   : > { %p3397_p13 = scmp.ne.s32.totalorder %s5449_s4, %s3396_s18  ;;  %p3403_p3 = scmp.lt.u32.totalorder %s3396_s18, %s5449_s4 }
  0x19   : > { %p4103_p12 = pnand %p5456_p9, %p2792_p11 }
  0x1b   : > { %p3398_p0 = pneg %p4103_p12 }
  0x1d   : > { %p3399_p1 = pnand %p3398_p0, %p3397_p13 }
  0x1f   : > { %p3400_p2 = pneg %p3399_p1 }
  0x21   : > { %p3405_p4 = pnand %p3403_p3, %p3400_p2 }
  0x23   : > { %3408 = shalt.err (!%p3405_p4)
}
  0x24   : > { %s3409_s29 = scalar_lea.vmem %s302_s27, 256  ;;  %p3417_p9 = scmp.lt.s32.totalorder %s302_s27, %s302_s27 }
  0x25   : > { %p3410_p7 = scmp.ne.s32.totalorder %s302_s27, %s3409_s29  ;;  %p3418_p6 = scmp.lt.s32.totalorder %s3409_s29, %s3409_s29 }
  0x27   : > { %p3412_p8 = pnand %p3410_p7, %p3398_p0  ;;  %p3419_p5 = por %p3418_p6, %p3417_p9 }
  0x29   : > { %p3413_p11 = pneg %p3412_p8 }
  0x2b   : > { %p3420_p10 = pnand %p3419_p5, %p3413_p11 }
  0x2d   : > { %3423 = shalt.err (!%p3420_p10)
}
  0x2e   : > { %s3974_s11 = smov 64   ;;  %s3975_s12 = smov 4  }
  0x2f   : > { %2795 = dma.hbm_to_vmem [thread:$0]  (!%p4103_p12), %s5449_s4, 256, %s302_s27, [#allocation7], %s3974_s11, %s3974_s11, %s3975_s12  }
  0x30   : > { %s3424_s26 = scalar_lea.hbm %s5451_s6, 256 }
  0x31   : > { %p3425_p13 = scmp.ne.s32.totalorder %s5451_s6, %s3424_s26  ;;  %p3431_p9 = scmp.lt.u32.totalorder %s3424_s26, %s5451_s6 }
  0x33   : > { %p3427_p5 = pnand %p3425_p13, %p3398_p0 }
  0x35   : > { %p3428_p6 = pneg %p3427_p5 }
  0x37   : > { %p3433_p10 = pnand %p3431_p9, %p3428_p6 }
  0x39   : > { %3436 = shalt.err (!%p3433_p10)
}
  0x3a   : > { %s3437_s27 = scalar_lea.vmem %s4107_s30, 256  ;;  %p3445_p4 = scmp.lt.s32.totalorder %s4107_s30, %s4107_s30 }
  0x3b   : > { %p3438_p1 = scmp.ne.s32.totalorder %s4107_s30, %s3437_s27  ;;  %p3446_p7 = scmp.lt.s32.totalorder %s3437_s27, %s3437_s27 }
  0x3d   : > { %p3440_p2 = pnand %p3438_p1, %p3398_p0  ;;  %p3447_p8 = por %p3446_p7, %p3445_p4 }
  0x3f   : > { %p3441_p3 = pneg %p3440_p2 }
  0x41   : > { %p3448_p11 = pnand %p3447_p8, %p3441_p3 }
  0x43   : > { %3451 = shalt.err (!%p3448_p11)
}
  0x44   : > { %2798 = dma.hbm_to_vmem [thread:$0]  (!%p4103_p12), %s5451_s6, 256, %s4107_s30, [#allocation10], %s3974_s11, %s3974_s11, %s3975_s12  }
  0x45   : > { %p5471_p13 = scmp.ne.s32.totalorder %s5469_s25, 0 }
  0x46   : > { %p5472_p5 = scmp.eq.s32.totalorder (!%p5471_p13), %s4067_s17, 0 }
  0x47   : > { %347 = sbr.rel (%p5471_p13) target bundleno = 4368 (0x1110), region = 56 }
  0x4e   : > { %3733 = dma.done.wait (%p5472_p5), [#allocation7], 256   ;;  %p5473_p0 = pmov %p5472_p5 }
  0x50   : > { %3735 = vsyncadd (%p5473_p0), [#allocation7], 4294967040  ;;  %p5474_p6 = pmov %p5473_p0 }
  0x51   : > { %p5475_p9 = pmov %p5473_p0 }
  0x52   : > { %3737 = dma.done.wait (%p5474_p6), [#allocation10], 256  }
  0x53   : > { %3739 = vsyncadd (%p5475_p9), [#allocation10], 4294967040  ;;  %p394_p10 = scmp.lt.s32.totalorder %s4067_s17, 1  ;;  %vm409_vm0 = vcmask 261120   ;;  %s4192_s12 = sand.u32 1, %s3754_s14   ;;  %v3276_v12 = vld [vmem:[%s5448_s3] sm:$0xff]  }
  0x54   : > { %v3277_v13 = vld [vmem:[#allocation6] sm:$0xff]   ;;  %v3278_v14 = vld [vmem:[%s5448_s3 + $0x8] sm:$0xff]   ;;  %s2587_s26 = sshll.u32 %s4192_s12, 5  ;;  %s2588_s29 = sshll.u32 %s4192_s12, 4  ;;  %2696 = vmatprep.subr.bf16.mxu0 %v3276_v12  ;;  %v4222_v19 = vld [vmem:[%s5452_s7 + $0x10] sm:$0xff]  ;;  %vm627_vm1 = vcmask 31744  }
  0x55   : > { %s395_s24 = scalar_select %p394_p10, %s4067_s17, 1  ;;  %v3279_v15 = vld [vmem:[#allocation6 + $0x8] sm:$0xff]   ;;  %2704 = vmatprep.subr.bf16.mxu1 %v3277_v13  ;;  %2697 = vmatpush3.bf16.msra.mxu0 %v3276_v12  ;;  %v3280_v16 = vld [vmem:[%s5450_s5] sm:$0xff]   ;;  %v4227_v20 = vld [vmem:[%s5452_s7 + $0x18] sm:$0xff]  ;;  %vm642_vm2 = vcmask 64512   ;;  %vm755_vm3 = vcmask 130112  }
  0x56   : > { %2705 = vmatpush3.bf16.msra.mxu1 %v3277_v13  ;;  %2698 = vmatprep.subr.bf16.mxu0 %v3278_v14  ;;  %v4208_v17 = vld [vmem:[%s5452_s7] sm:$0xff]  ;;  %v4213_v18 = vld [vmem:[%s5452_s7 + $0x8] sm:$0xff]  ;;  %s3976_s25 = smov 8   ;;  %s3977_s21 = smov 16   ;;  %v4378_v13 = vld [vmem:[%s5453_s8 + $0x10] sm:$0xff]  ;;  %vm864_vm4 = vcmask 195712  }
  0x57   : > { %s2649_s28 = sshll.u32 %s395_s24, 5  ;;  %2706 = vmatprep.subr.bf16.mxu1 %v3279_v15  ;;  %v2591_v37 = vld [vmem:[%s5446_s1] ss:$0 sm:$0xff]  ;;  %v3281_v48 = vld [vmem:[%s5450_s5 + $0x8] sm:$0xff]   ;;  %s3979_s30 = smov 124   ;;  %vm973_vm5 = vcmask 261312  }
  0x58   : > { %s398_s11 = scalar_lea.vmem %s5445_s0, %s2649_s28  ;;  %s3978_s28 = smov 4  }
  0x59   : > { %v4171_v0 = vld [vmem:[%s398_s11 + $0x10] sm:$0xff]  ;;  %v4173_v1 = vld [vmem:[%s398_s11] sm:$0xff]  ;;  %v4175_v2 = vld [vmem:[%s398_s11 + $0x18] sm:$0xff]  ;;  %2699 = vmatpush3.bf16.msra.mxu0 %v3278_v14  ;;  %s3981_s22 = smov 108   ;;  %s3982_s18 = smov 100  }
  0x5a   : > { %v407_v3 = vmul.f32 %v4171_v0, %v4171_v0  ;;  %v405_v4 = vmul.f32 %v4173_v1, %v4173_v1  ;;  %v408_v5 = vmul.f32 %v4175_v2, %v4175_v2  ;;  %v4183_v6 = vld [vmem:[%s398_s11 + $0x8] sm:$0xff]  ;;  %2707 = vmatpush3.bf16.msra.mxu1 %v3279_v15  ;;  %2712 = vmatprep.subr.bf16.mxu0 %v3280_v16  ;;  %s3980_s11 = smov 116   ;;  %s3983_s20 = smov 24  }
  0x5b   : > { %v406_v7 = vmul.f32 %v4183_v6, %v4183_v6  ;;  %s4615_s27 = scalar_lea.vmem [#allocation11], %s2587_s26  ;;  %s4619_s15 = scalar_lea.vmem [#allocation12], %s2588_s29 }
  0x5c   : > { %v416_v8 = vsel %vm409_vm0, %v407_v3, 0.0  ;;  %v410_v9 = vsel %vm409_vm0, %v405_v4, 0.0  ;;  %v419_v10 = vsel %vm409_vm0, %v408_v5, 0.0  ;;  %s4645_s26 = smov 0  }
  0x5d   : > { %417 = vadd.xlane.f32.xlu1 %v416_v8  ;;  %411 = vadd.xlane.f32.xlu0 %v410_v9  ;;  %v413_v11 = vsel %vm409_vm0, %v406_v7, 0.0 }
  0x61   : > { %420 = vadd.xlane.f32.xlu1 %v419_v10  ;;  %414 = vadd.xlane.f32.xlu0 %v413_v11 }
  0x72   : > { %699 = vrot.lane.b32.xlu1 %v4213_v18, %s3976_s25 }
  0x76   : > { %703 = vrot.lane.b32.xlu1 %v4227_v20, %s3976_s25 }
  0x77   : > { %697 = vrot.lane.b32.xlu0 %v4208_v17, %s3976_s25 }
  0x7a   : > { %808 = vrot.lane.b32.xlu1 %v4213_v18, %s3977_s21 }
  0x7b   : > { %701 = vrot.lane.b32.xlu0 %v4222_v19, %s3976_s25 }
  0x7f   : > { %806 = vrot.lane.b32.xlu0 %v4208_v17, %s3977_s21 }
  0xea   : > { %v418_v21 = vpop.xlane.xlu1 %417  ;;  %v412_v22 = vpop.xlane.xlu0 %411 }
  0xeb   : > { %v425_v23 = vmul.f32 0.03125, %v418_v21  ;;  %v423_v24 = vmul.f32 0.03125, %v412_v22  ;;  %v4386_v21 = vld [vmem:[%s5453_s8 + $0x18] sm:$0xff] }
  0xed   : > { %v429_v25 = vadd.f32 1e-06, %v425_v23  ;;  %v427_v26 = vadd.f32 1e-06, %v423_v24 }
  0xee   : > { %v421_v27 = vpop.xlane.xlu1 %420  ;;  %v415_v28 = vpop.xlane.xlu0 %414 }
  0xef   : > { %3282 = vrsqrt.f32 %v429_v25  ;;  %v426_v29 = vmul.f32 0.03125, %v421_v27  ;;  %v424_v30 = vmul.f32 0.03125, %v415_v28 }
  0xf0   : > { %3284 = vrsqrt.f32 %v427_v26 }
  0xf1   : > { %v430_v31 = vadd.f32 1e-06, %v426_v29  ;;  %v428_v32 = vadd.f32 1e-06, %v424_v30 }
  0xf2   : > { %v4363_v63 = vpop.permute.xlu0 %697  ;;  %v4365_v3 = vpop.permute.xlu1 %699 }
  0xf3   : > { %3286 = vrsqrt.f32 %v430_v31 }
  0xf4   : > { %3288 = vrsqrt.f32 %v428_v32 }
  0xf6   : > { %v4367_v4 = vpop.permute.xlu0 %701  ;;  %v4369_v5 = vpop.permute.xlu1 %703 }
  0xf9   : > { %v3283_v33 = vpop.eup %3282 }
  0xfa   : > { %v3285_v34 = vpop.eup %3284  ;;  %v437_v35 = vmul.f32 %v3283_v33, %v4171_v0  ;;  %v4371_v7 = vpop.permute.xlu0 %806 }
  0xfb   : > { %v435_v38 = vmul.f32 %v3285_v34, %v4173_v1  ;;  %v4373_v8 = vpop.permute.xlu1 %808 }
  0xfc   : > { %v447_v42 = vmul.f32 %v2591_v37, %v437_v35 }
  0xfd   : > { %v3287_v36 = vpop.eup %3286  ;;  %v445_v44 = vmul.f32 %v2591_v37, %v435_v38 }
  0xfe   : > { %v3289_v39 = vpop.eup %3288  ;;  %v438_v40 = vmul.f32 %v3287_v36, %v4175_v2 }
  0xff   : > { %v436_v41 = vmul.f32 %v3289_v39, %v4183_v6 }
 0x100   : > { %v448_v43 = vmul.f32 %v2591_v37, %v438_v40 }
 0x101   : > { %v446_v45 = vmul.f32 %v2591_v37, %v436_v41 }
 0x102   : > { %v450_v46 = vpack.c.bf16 %v448_v43, %v447_v42 }
 0x103   : > { %v449_v47 = vpack.c.bf16 %v446_v45, %v445_v44 }
 0x105   : > { %2700 = vmatprep.mubr.msk.bf16.mxu0 %vm409_vm0, %v449_v47  ;;  %2708 = vmatprep.mubr.msk.bf16.mxu1 %vm409_vm0, %v449_v47 }
 0x106   : > { %2701 = vmatmul.mubr.msk.bf16.vlgmr.msra.gmra.mrb[0].mxu0 %vm409_vm0, %v450_v46  ;;  %2709 = vmatmul.mubr.msk.bf16.vlgmr.msra.gmra.mrb[0].mxu1 %vm409_vm0, %v450_v46 }
 0x107   : > { %2713 = vmatpush3.bf16.msra.mxu0 %v3280_v16  ;;  %2716 = vmatprep.mubr.msk.bf16.mxu0 %vm409_vm0, %v449_v47 }
 0x108   : > { %2714 = vmatprep.subr.bf16.mxu0 %v3281_v48 }
 0x10b   : > { %2715 = vmatpush3.bf16.msra.mxu0 %v3281_v48 }
 0x10e   : > { %2717 = vmatmul.mubr.msk.bf16.vlgmr.msra.gmra.mrb[4].mxu0 %vm409_vm0, %v450_v46 }
 0x1d9   : > { %v4253_v49 = vpop.f32.mrb[0].mxu0  ;;  %v4255_v50 = vpop.f32.mrb[0].mxu1 }
 0x1da   : > { %v4257_v51 = vpop.f32.mrb[1].mxu1  ;;  %619 = vrot.lane.b32.xlu0 %v4253_v49, %s3978_s28  ;;  %607 = vrot.lane.b32.xlu1 %v4253_v49, %s3979_s30  ;;  %v4263_v52 = vpop.f32.mrb[1].mxu0  ;;  %v597_v27 = vmul.f32 %v4253_v49, %v4222_v19 }
 0x1db   : > { %v4265_v53 = vpop.f32.mrb[2].mxu0  ;;  %v4267_v54 = vpop.f32.mrb[2].mxu1 }
 0x1dc   : > { %v4269_v55 = vpop.f32.mrb[3].mxu0  ;;  %v4271_v56 = vpop.f32.mrb[3].mxu1  ;;  %v598_v28 = vmul.f32 %v4265_v53, %v4227_v20 }
 0x1de   : > { %717 = vrot.lane.b32.xlu0 %v4253_v49, %s3980_s11  ;;  %609 = vrot.lane.b32.xlu1 %v4265_v53, %s3979_s30 }
 0x1e1   : > { %v2718_v57 = vpop.f32.mrb[4].mxu0 }
 0x1e2   : > { %826 = vrot.lane.b32.xlu0 %v4253_v49, %s3981_s22  ;;  %621 = vrot.lane.b32.xlu1 %v4265_v53, %s3978_s28  ;;  %v1074_v58 = vpop.f32.mrb[5].mxu0 }
 0x1e3   : > { %v2719_v59 = vpop.f32.mrb[6].mxu0 }
 0x1e4   : > { %v1090_v60 = vpack.c.bf16 %v2719_v59, %v2718_v57  ;;  %v1077_v61 = vpop.f32.mrb[7].mxu0 }
 0x1e5   : > { %v1089_v62 = vpack.c.bf16 %v1077_v61, %v1074_v58 }
 0x1e6   : > { %1092 = vst.msk [vmem:[#allocation4 + $0x8] sm:$0xff] %vm409_vm0, %v1090_v60  ;;  %935 = vrot.lane.b32.xlu0 %v4253_v49, %s3982_s18  ;;  %719 = vrot.lane.b32.xlu1 %v4265_v53, %s3980_s11 }
 0x1e7   : > { %1091 = vst.msk [vmem:[#allocation4] sm:$0xff] %vm409_vm0, %v1089_v62 }
 0x1ea   : > { %657 = vrot.lane.b32.xlu0 %v4255_v50, %s3979_s30  ;;  %828 = vrot.lane.b32.xlu1 %v4265_v53, %s3981_s22 }
 0x1ee   : > { %766 = vrot.lane.b32.xlu0 %v4255_v50, %s3980_s11  ;;  %937 = vrot.lane.b32.xlu1 %v4265_v53, %s3982_s18 }
 0x1f2   : > { %875 = vrot.lane.b32.xlu0 %v4255_v50, %s3981_s22  ;;  %659 = vrot.lane.b32.xlu1 %v4267_v54, %s3979_s30 }
 0x1f6   : > { %984 = vrot.lane.b32.xlu0 %v4255_v50, %s3982_s18  ;;  %768 = vrot.lane.b32.xlu1 %v4267_v54, %s3980_s11 }
 0x1fa   : > { %669 = vrot.lane.b32.xlu0 %v4255_v50, %s3978_s28  ;;  %877 = vrot.lane.b32.xlu1 %v4267_v54, %s3981_s22 }
 0x1fe   : > { %603 = vrot.lane.b32.xlu0 %v4263_v52, %s3979_s30  ;;  %986 = vrot.lane.b32.xlu1 %v4267_v54, %s3982_s18 }
 0x202   : > { %615 = vrot.lane.b32.xlu0 %v4263_v52, %s3978_s28  ;;  %671 = vrot.lane.b32.xlu1 %v4267_v54, %s3978_s28 }
 0x206   : > { %653 = vrot.lane.b32.xlu0 %v4257_v51, %s3979_s30  ;;  %605 = vrot.lane.b32.xlu1 %v4269_v55, %s3979_s30 }
 0x20a   : > { %713 = vrot.lane.b32.xlu0 %v4263_v52, %s3980_s11  ;;  %617 = vrot.lane.b32.xlu1 %v4269_v55, %s3978_s28 }
 0x20e   : > { %822 = vrot.lane.b32.xlu0 %v4263_v52, %s3981_s22  ;;  %655 = vrot.lane.b32.xlu1 %v4271_v56, %s3979_s30 }
 0x212   : > { %931 = vrot.lane.b32.xlu0 %v4263_v52, %s3982_s18  ;;  %715 = vrot.lane.b32.xlu1 %v4269_v55, %s3980_s11 }
 0x216   : > { %762 = vrot.lane.b32.xlu0 %v4257_v51, %s3980_s11  ;;  %824 = vrot.lane.b32.xlu1 %v4269_v55, %s3981_s22 }
 0x21a   : > { %871 = vrot.lane.b32.xlu0 %v4257_v51, %s3981_s22  ;;  %933 = vrot.lane.b32.xlu1 %v4269_v55, %s3982_s18 }
 0x21e   : > { %980 = vrot.lane.b32.xlu0 %v4257_v51, %s3982_s18  ;;  %764 = vrot.lane.b32.xlu1 %v4271_v56, %s3980_s11 }
 0x222   : > { %810 = vrot.lane.b32.xlu0 %v4222_v19, %s3977_s21  ;;  %873 = vrot.lane.b32.xlu1 %v4271_v56, %s3981_s22 }
 0x226   : > { %665 = vrot.lane.b32.xlu0 %v4257_v51, %s3978_s28  ;;  %982 = vrot.lane.b32.xlu1 %v4271_v56, %s3982_s18 }
 0x22a   : > { %915 = vrot.lane.b32.xlu0 %v4208_v17, %s3983_s20  ;;  %812 = vrot.lane.b32.xlu1 %v4227_v20, %s3977_s21 }
 0x22e   : > { %919 = vrot.lane.b32.xlu0 %v4222_v19, %s3983_s20  ;;  %917 = vrot.lane.b32.xlu1 %v4213_v18, %s3983_s20 }
 0x232   : > { %921 = vrot.lane.b32.xlu1 %v4227_v20, %s3983_s20 }
 0x236   : > { %667 = vrot.lane.b32.xlu1 %v4271_v56, %s3978_s28 }
 0x24c   : > { %v608_v9 = vpop.permute.xlu1 %607  ;;  %v620_v10 = vpop.permute.xlu0 %619 }
 0x24d   : > { %v630_v14 = vsel %vm627_vm1, %v608_v9, %v620_v10 }
 0x24e   : > { %v634_v22 = vmul.f32 %v630_v14, %v4378_v13 }
 0x250   : > { %v610_v11 = vpop.permute.xlu1 %609  ;;  %v718_v12 = vpop.permute.xlu0 %717  ;;  %v638_v31 = vadd.f32 %v634_v22, %v597_v27 }
 0x251   : > { %v727_v15 = vsel %vm627_vm1, %v718_v12, %v608_v9 }
 0x252   : > { %v731_v16 = vmul.f32 %v727_v15, %v4378_v13 }
 0x254   : > { %v622_v23 = vpop.permute.xlu1 %621  ;;  %741 = vrot.lane.b32.xlu0 %v731_v16, %s3976_s25  ;;  %v827_v24 = vpop.permute.xlu0 %826 }
 0x255   : > { %v631_v25 = vsel %vm627_vm1, %v610_v11, %v622_v23  ;;  %v836_v26 = vsel %vm627_vm1, %v827_v24, %v718_v12 }
 0x256   : > { %v635_v29 = vmul.f32 %v631_v25, %v4386_v21  ;;  %v840_v30 = vmul.f32 %v836_v26, %v4378_v13 }
 0x258   : > { %v639_v32 = vadd.f32 %v635_v29, %v598_v28  ;;  %v720_v33 = vpop.permute.xlu1 %719  ;;  %850 = vrot.lane.b32.xlu0 %v840_v30, %s3977_s21  ;;  %v936_v34 = vpop.permute.xlu0 %935  ;;  %v647_v29 = vmul.f32 %v4255_v50, %v4222_v19  ;;  %v648_v30 = vmul.f32 %v4267_v54, %v4227_v20  ;;  %v4453_v19 = vld [vmem:[%s5453_s8 + $0x8] sm:$0xff] }
 0x259   : > { %v728_v35 = vsel %vm627_vm1, %v720_v33, %v610_v11  ;;  %v945_v36 = vsel %vm627_vm1, %v936_v34, %v827_v24 }
 0x25a   : > { %v641_v37 = vpack.c.bf16 %v639_v32, %v638_v31  ;;  %v732_v38 = vmul.f32 %v728_v35, %v4386_v21  ;;  %v949_v39 = vmul.f32 %v945_v36, %v4378_v13  ;;  %v4447_v36 = vld [vmem:[%s5453_s8] sm:$0xff] }
 0x25c   : > { %644 = vst.msk [vmem:[#allocation2 + $0x8] sm:$0xff] %vm642_vm2, %v641_v37  ;;  %v829_v40 = vpop.permute.xlu1 %828  ;;  %743 = vrot.lane.b32.xlu1 %v732_v38, %s3976_s25  ;;  %959 = vrot.lane.b32.xlu0 %v949_v39, %s3983_s20  ;;  %v658_v41 = vpop.permute.xlu0 %657 }
 0x25d   : > { %v837_v42 = vsel %vm627_vm1, %v829_v40, %v720_v33 }
 0x25e   : > { %v841_v43 = vmul.f32 %v837_v42, %v4386_v21 }
 0x260   : > { %v938_v44 = vpop.permute.xlu1 %937  ;;  %852 = vrot.lane.b32.xlu1 %v841_v43, %s3977_s21  ;;  %v767_v45 = vpop.permute.xlu0 %766  ;;  %v595_v43 = vmul.f32 %v4208_v17, %v4263_v52 }
 0x261   : > { %v946_v46 = vsel %vm627_vm1, %v938_v44, %v829_v40  ;;  %v776_v47 = vsel %vm627_vm1, %v767_v45, %v658_v41  ;;  %v596_v44 = vmul.f32 %v4213_v18, %v4269_v55 }
 0x262   : > { %v950_v48 = vmul.f32 %v946_v46, %v4386_v21  ;;  %v780_v57 = vmul.f32 %v776_v47, %v4378_v13 }
 0x264   : > { %v660_v58 = vpop.permute.xlu1 %659  ;;  %961 = vrot.lane.b32.xlu1 %v950_v48, %s3983_s20  ;;  %790 = vrot.lane.b32.xlu0 %v780_v57, %s3976_s25  ;;  %v4415_v59 = vpop.permute.xlu0 %875 }
 0x265   : > { %v885_v60 = vsel %vm627_vm1, %v4415_v59, %v767_v45 }
 0x266   : > { %v889_v61 = vmul.f32 %v885_v60, %v4378_v13 }
 0x268   : > { %v769_v62 = vpop.permute.xlu1 %768  ;;  %899 = vrot.lane.b32.xlu0 %v889_v61, %s3977_s21  ;;  %v4421_v9 = vpop.permute.xlu0 %984 }
 0x269   : > { %v777_v10 = vsel %vm627_vm1, %v769_v62, %v660_v58 }
 0x26a   : > { %v781_v11 = vmul.f32 %v777_v10, %v4386_v21 }
 0x26c   : > { %v4425_v12 = vpop.permute.xlu1 %877  ;;  %792 = vrot.lane.b32.xlu1 %v781_v11, %s3976_s25  ;;  %v670_v14 = vpop.permute.xlu0 %669 }
 0x26d   : > { %v886_v15 = vsel %vm627_vm1, %v4425_v12, %v769_v62  ;;  %v679_v24 = vsel %vm627_vm1, %v658_v41, %v670_v14 }
 0x26e   : > { %v890_v16 = vmul.f32 %v886_v15, %v4386_v21  ;;  %v683_v25 = vmul.f32 %v679_v24, %v4378_v13 }
 0x270   : > { %v4431_v22 = vpop.permute.xlu1 %986  ;;  %901 = vrot.lane.b32.xlu1 %v890_v16, %s3977_s21  ;;  %v604_v23 = vpop.permute.xlu0 %603  ;;  %v687_v32 = vadd.f32 %v683_v25, %v647_v29 }
 0x274   : > { %v672_v26 = vpop.permute.xlu1 %671  ;;  %v616_v27 = vpop.permute.xlu0 %615 }
 0x275   : > { %v680_v28 = vsel %vm627_vm1, %v660_v58, %v672_v26  ;;  %v628_v37 = vsel %vm627_vm1, %v604_v23, %v616_v27 }
 0x276   : > { %v684_v31 = vmul.f32 %v680_v28, %v4386_v21  ;;  %v632_v20 = vmul.f32 %v628_v37, %v4447_v36 }
 0x278   : > { %v688_v33 = vadd.f32 %v684_v31, %v648_v30  ;;  %v606_v34 = vpop.permute.xlu1 %605  ;;  %v4442_v35 = vpop.permute.xlu0 %653  ;;  %v636_v47 = vadd.f32 %v632_v20, %v595_v43  ;;  %v994_v43 = vsel %vm627_vm1, %v4421_v9, %v4415_v59 }
 0x27a   : > { %v690_v38 = vpack.c.bf16 %v688_v33, %v687_v32 }
 0x27c   : > { %692 = vst.msk [vmem:[#allocation3 + $0x8] sm:$0xff] %vm642_vm2, %v690_v38  ;;  %v618_v39 = vpop.permute.xlu1 %617  ;;  %v714_v40 = vpop.permute.xlu0 %713 }
 0x27d   : > { %v629_v41 = vsel %vm627_vm1, %v606_v34, %v618_v39  ;;  %v725_v42 = vsel %vm627_vm1, %v714_v40, %v604_v23 }
 0x27e   : > { %v633_v45 = vmul.f32 %v629_v41, %v4453_v19  ;;  %v729_v46 = vmul.f32 %v725_v42, %v4447_v36 }
 0x280   : > { %v637_v48 = vadd.f32 %v633_v45, %v596_v44  ;;  %v4465_v57 = vpop.permute.xlu1 %655  ;;  %737 = vrot.lane.b32.xlu0 %v729_v46, %s3976_s25  ;;  %v823_v58 = vpop.permute.xlu0 %822 }
 0x281   : > { %v834_v60 = vsel %vm627_vm1, %v823_v58, %v714_v40 }
 0x282   : > { %v640_v61 = vpack.c.bf16 %v637_v48, %v636_v47  ;;  %v838_v62 = vmul.f32 %v834_v60, %v4447_v36  ;;  %v998_v47 = vmul.f32 %v994_v43, %v4378_v13 }
 0x284   : > { %643 = vst.msk [vmem:[#allocation2] sm:$0xff] %vm642_vm2, %v640_v61  ;;  %v716_v10 = vpop.permute.xlu1 %715  ;;  %846 = vrot.lane.b32.xlu0 %v838_v62, %s3977_s21  ;;  %v932_v11 = vpop.permute.xlu0 %931 }
 0x285   : > { %v726_v14 = vsel %vm627_vm1, %v716_v10, %v606_v34  ;;  %v943_v15 = vsel %vm627_vm1, %v932_v11, %v823_v58  ;;  %v1093_v58 = vlaneseq }
 0x286   : > { %v730_v16 = vmul.f32 %v726_v14, %v4453_v19  ;;  %v947_v23 = vmul.f32 %v943_v15, %v4447_v36  ;;  %v995_v14 = vsel %vm627_vm1, %v4431_v22, %v4425_v12 }
 0x287   : > { %v4508_v9 = vshrl.u32 %v1093_v58, 7  ;;  %v4510_v61 = vand.u32 127, %v1093_v58 }
 0x288   : > { %739 = vrot.lane.b32.xlu1 %v730_v16, %s3976_s25  ;;  %v825_v24 = vpop.permute.xlu1 %824  ;;  %955 = vrot.lane.b32.xlu0 %v947_v23, %s3983_s20  ;;  %v763_v25 = vpop.permute.xlu0 %762 }
 0x289   : > { %v835_v26 = vsel %vm627_vm1, %v825_v24, %v716_v10  ;;  %v774_v27 = vsel %vm627_vm1, %v763_v25, %v4442_v35  ;;  %v4515_v11 = vadd.s32 8, %v4508_v9  ;;  %v4518_v13 = vadd.s32 16, %v4508_v9 }
 0x28a   : > { %v839_v28 = vmul.f32 %v835_v26, %v4453_v19  ;;  %v778_v29 = vmul.f32 %v774_v27, %v4447_v36  ;;  %v4524_v15 = vadd.s32 24, %v4508_v9  ;;  %v999_v26 = vmul.f32 %v995_v14, %v4386_v21 }
 0x28c   : > { %848 = vrot.lane.b32.xlu1 %v839_v28, %s3977_s21  ;;  %v934_v30 = vpop.permute.xlu1 %933  ;;  %786 = vrot.lane.b32.xlu0 %v778_v29, %s3976_s25  ;;  %v872_v31 = vpop.permute.xlu0 %871 }
 0x28d   : > { %v944_v32 = vsel %vm627_vm1, %v934_v30, %v825_v24  ;;  %v883_v33 = vsel %vm627_vm1, %v872_v31, %v763_v25 }
 0x28e   : > { %v948_v34 = vmul.f32 %v944_v32, %v4453_v19  ;;  %v887_v37 = vmul.f32 %v883_v33, %v4447_v36 }
 0x290   : > { %957 = vrot.lane.b32.xlu1 %v948_v34, %s3983_s20  ;;  %v765_v38 = vpop.permute.xlu1 %764  ;;  %895 = vrot.lane.b32.xlu0 %v887_v37, %s3977_s21  ;;  %v981_v20 = vpop.permute.xlu0 %980  ;;  %v645_v37 = vmul.f32 %v4208_v17, %v4257_v51 }
 0x291   : > { %v775_v39 = vsel %vm627_vm1, %v765_v38, %v4465_v57  ;;  %v992_v40 = vsel %vm627_vm1, %v981_v20, %v872_v31 }
 0x292   : > { %v779_v41 = vmul.f32 %v775_v39, %v4453_v19  ;;  %v996_v42 = vmul.f32 %v992_v40, %v4447_v36 }
 0x294   : > { %788 = vrot.lane.b32.xlu1 %v779_v41, %s3976_s25  ;;  %v874_v44 = vpop.permute.xlu1 %873  ;;  %1004 = vrot.lane.b32.xlu0 %v996_v42, %s3983_s20  ;;  %v4501_v45 = vpop.permute.xlu0 %810 }
 0x295   : > { %v884_v46 = vsel %vm627_vm1, %v874_v44, %v765_v38  ;;  %v646_v38 = vmul.f32 %v4213_v18, %v4271_v56  ;;  %v820_v18 = vmul.f32 %v4253_v49, %v4501_v45 }
 0x296   : > { %v888_v48 = vmul.f32 %v884_v46, %v4453_v19 }
 0x298   : > { %897 = vrot.lane.b32.xlu1 %v888_v48, %s3977_s21  ;;  %v983_v60 = vpop.permute.xlu1 %982  ;;  %1008 = vrot.lane.b32.xlu0 %v998_v47, %s3983_s20  ;;  %v666_v59 = vpop.permute.xlu0 %665 }
 0x299   : > { %v993_v62 = vsel %vm627_vm1, %v983_v60, %v874_v44  ;;  %v677_v31 = vsel %vm627_vm1, %v4442_v35, %v666_v59 }
 0x29a   : > { %v997_v10 = vmul.f32 %v993_v62, %v4453_v19  ;;  %v681_v21 = vmul.f32 %v677_v31, %v4447_v36  ;;  %v711_v36 = vmul.f32 %v4253_v49, %v4367_v4 }
 0x29c   : > { %1006 = vrot.lane.b32.xlu1 %v997_v10, %s3983_s20  ;;  %v813_v16 = vpop.permute.xlu1 %812  ;;  %v4527_v23 = vpop.permute.xlu0 %915  ;;  %v685_v39 = vadd.f32 %v681_v21, %v645_v37  ;;  %v760_v21 = vmul.f32 %v4255_v50, %v4367_v4 }
 0x29d   : > { %v870_v24 = vmul.f32 %v4267_v54, %v813_v16  ;;  %v4532_v25 = vmul.f32 %v4527_v23, %v4257_v51 }
 0x2a0   : > { %1010 = vrot.lane.b32.xlu1 %v999_v26, %s3983_s20  ;;  %v918_v27 = vpop.permute.xlu1 %917  ;;  %v920_v12 = vpop.permute.xlu0 %919 }
 0x2a1   : > { %v4537_v22 = vmul.f32 %v918_v27, %v4269_v55  ;;  %v4540_v28 = vmul.f32 %v918_v27, %v4271_v56  ;;  %v4543_v29 = vmul.f32 %v4255_v50, %v920_v12  ;;  %v929_v59 = vmul.f32 %v4253_v49, %v920_v12 }
 0x2a4   : > { %v922_v30 = vpop.permute.xlu1 %921 }
 0x2a5   : > { %v4548_v32 = vmul.f32 %v4267_v54, %v922_v30  ;;  %v930_v62 = vmul.f32 %v4265_v53, %v922_v30 }
 0x2a8   : > { %v668_v33 = vpop.permute.xlu1 %667 }
 0x2a9   : > { %v678_v34 = vsel %vm627_vm1, %v4465_v57, %v668_v33  ;;  %v712_v57 = vmul.f32 %v4265_v53, %v4369_v5  ;;  %v761_v33 = vmul.f32 %v4267_v54, %v4369_v5  ;;  %v709_v5 = vmul.f32 %v4363_v63, %v4263_v52 }
 0x2aa   : > { %v682_v20 = vmul.f32 %v678_v34, %v4453_v19  ;;  %v821_v19 = vmul.f32 %v4265_v53, %v813_v16  ;;  %v869_v34 = vmul.f32 %v4255_v50, %v4501_v45 }
 0x2ac   : > { %v686_v40 = vadd.f32 %v682_v20, %v646_v38 }
 0x2ae   : > { %v689_v35 = vpack.c.bf16 %v686_v40, %v685_v39 }
 0x2b0   : > { %691 = vst.msk [vmem:[#allocation3] sm:$0xff] %vm642_vm2, %v689_v35 }
 0x2c6   : > { %v742_v41 = vpop.permute.xlu0 %741 }
 0x2c7   : > { %v751_v17 = vadd.f32 %v742_v41, %v711_v36  ;;  %v710_v41 = vmul.f32 %v4365_v3, %v4269_v55 }
 0x2ca   : > { %v851_v42 = vpop.permute.xlu0 %850 }
 0x2cb   : > { %v860_v48 = vadd.f32 %v851_v42, %v820_v18  ;;  %v818_v42 = vmul.f32 %v4371_v7, %v4263_v52 }
 0x2ce   : > { %v744_v43 = vpop.permute.xlu1 %743  ;;  %v960_v60 = vpop.permute.xlu0 %959 }
 0x2cf   : > { %v752_v44 = vadd.f32 %v744_v43, %v712_v57  ;;  %v969_v26 = vadd.f32 %v960_v60, %v929_v59 }
 0x2d1   : > { %v754_v46 = vpack.c.bf16 %v752_v44, %v751_v17 }
 0x2d2   : > { %v853_v47 = vpop.permute.xlu1 %852 }
 0x2d3   : > { %757 = vst.msk [vmem:[#allocation2 + $0x8] sm:$0xff] %vm755_vm3, %v754_v46  ;;  %v861_v58 = vadd.f32 %v853_v47, %v821_v19  ;;  %v927_v46 = vmul.f32 %v4527_v23, %v4263_v52  ;;  %v867_v23 = vmul.f32 %v4371_v7, %v4257_v51 }
 0x2d5   : > { %v863_v10 = vpack.c.bf16 %v861_v58, %v860_v48 }
 0x2d6   : > { %v962_v14 = vpop.permute.xlu1 %961  ;;  %v791_v31 = vpop.permute.xlu0 %790 }
 0x2d7   : > { %866 = vst.msk [vmem:[#allocation2 + $0x8] sm:$0xff] %vm864_vm4, %v863_v10  ;;  %v970_v27 = vadd.f32 %v962_v14, %v930_v62  ;;  %v800_v12 = vadd.f32 %v791_v31, %v760_v21  ;;  %v759_v10 = vmul.f32 %v4365_v3, %v4271_v56 }
 0x2d9   : > { %v972_v16 = vpack.c.bf16 %v970_v27, %v969_v26 }
 0x2da   : > { %v900_v30 = vpop.permute.xlu0 %899 }
 0x2db   : > { %975 = vst.msk [vmem:[#allocation2 + $0x8] sm:$0xff] %vm973_vm5, %v972_v16  ;;  %v909_v39 = vadd.f32 %v900_v30, %v869_v34 }
 0x2de   : > { %v793_v49 = vpop.permute.xlu1 %792 }
 0x2df   : > { %v801_v53 = vadd.f32 %v793_v49, %v761_v33 }
 0x2e1   : > { %v803_v37 = vpack.c.bf16 %v801_v53, %v800_v12 }
 0x2e2   : > { %v4577_v38 = vld [vmem:[#allocation2 + $0x8] sm:$0xff]  ;;  %v902_v20 = vpop.permute.xlu1 %901 }
 0x2e3   : > { %805 = vst.msk [vmem:[#allocation3 + $0x8] sm:$0xff] %vm755_vm3, %v803_v37  ;;  %v910_v40 = vadd.f32 %v902_v20, %v870_v24  ;;  %v819_v24 = vmul.f32 %v4373_v8, %v4269_v55  ;;  %v758_v55 = vmul.f32 %v4363_v63, %v4257_v51  ;;  %v4625_v37 = vmov 0.0  }
 0x2e4   : > { %v4629_v20 = vmov 0.0  }
 0x2e5   : > { %v912_v35 = vpack.c.bf16 %v910_v40, %v909_v39  ;;  %v4633_v39 = vmov 0.0   ;;  %v4635_v40 = vmov 0.0  }
 0x2e7   : > { %914 = vst.msk [vmem:[#allocation3 + $0x8] sm:$0xff] %vm864_vm4, %v912_v35  ;;  %v4637_v35 = vmov -1e+30  }
 0x2f2   : > { %v738_v4 = vpop.permute.xlu0 %737 }
 0x2f3   : > { %v749_v36 = vadd.f32 %v738_v4, %v709_v5  ;;  %v4639_v4 = vmov -1e+30   ;;  %v4643_v5 = vmov -1e+30  }
 0x2f6   : > { %v847_v54 = vpop.permute.xlu0 %846 }
 0x2f7   : > { %v858_v18 = vadd.f32 %v847_v54, %v818_v42  ;;  %v4641_v54 = vmov -1e+30  }
 0x2fa   : > { %v740_v50 = vpop.permute.xlu1 %739  ;;  %v956_v45 = vpop.permute.xlu0 %955 }
 0x2fb   : > { %v750_v57 = vadd.f32 %v740_v50, %v710_v41  ;;  %v967_v58 = vadd.f32 %v956_v45, %v927_v46 }
 0x2fd   : > { %v753_v43 = vpack.c.bf16 %v750_v57, %v749_v36 }
 0x2fe   : > { %v849_v17 = vpop.permute.xlu1 %848  ;;  %v787_v44 = vpop.permute.xlu0 %786 }
 0x2ff   : > { %756 = vst.msk [vmem:[#allocation2] sm:$0xff] %vm755_vm3, %v753_v43  ;;  %v859_v19 = vadd.f32 %v849_v17, %v819_v24  ;;  %v798_v26 = vadd.f32 %v787_v44, %v758_v55 }
 0x301   : > { %v862_v47 = vpack.c.bf16 %v859_v19, %v858_v18 }
 0x302   : > { %v958_v48 = vpop.permute.xlu1 %957  ;;  %v896_v59 = vpop.permute.xlu0 %895 }
 0x303   : > { %865 = vst.msk [vmem:[#allocation2] sm:$0xff] %vm864_vm4, %v862_v47  ;;  %v968_v60 = vadd.f32 %v958_v48, %v4537_v22  ;;  %v868_v22 = vmul.f32 %v4373_v8, %v4271_v56  ;;  %v907_v21 = vadd.f32 %v896_v59, %v867_v23 }
 0x305   : > { %v971_v62 = vpack.c.bf16 %v968_v60, %v967_v58 }
 0x306   : > { %v789_v14 = vpop.permute.xlu1 %788  ;;  %v1005_v16 = vpop.permute.xlu0 %1004 }
 0x307   : > { %974 = vst.msk [vmem:[#allocation2] sm:$0xff] %vm973_vm5, %v971_v62  ;;  %v799_v52 = vadd.f32 %v789_v14, %v759_v10  ;;  %v1016_v12 = vadd.f32 %v1005_v16, %v4532_v25  ;;  %v4621_v25 = vmov 0.0  }
 0x309   : > { %v802_v27 = vpack.c.bf16 %v799_v52, %v798_v26 }
 0x30a   : > { %v898_v31 = vpop.permute.xlu1 %897  ;;  %v1009_v7 = vpop.permute.xlu0 %1008 }
 0x30b   : > { %804 = vst.msk [vmem:[#allocation3] sm:$0xff] %vm755_vm3, %v802_v27  ;;  %v908_v63 = vadd.f32 %v898_v31, %v868_v22  ;;  %v1018_v53 = vadd.f32 %v1009_v7, %v4543_v29  ;;  %v4627_v29 = vmov 0.0  }
 0x30d   : > { %v911_v3 = vpack.c.bf16 %v908_v63, %v907_v21 }
 0x30e   : > { %v4604_v33 = vld [vmem:[#allocation2] sm:$0xff]  ;;  %v1007_v49 = vpop.permute.xlu1 %1006 }
 0x30f   : > { %913 = vst.msk [vmem:[#allocation3] sm:$0xff] %vm864_vm4, %v911_v3  ;;  %v1017_v51 = vadd.f32 %v1007_v49, %v4540_v28  ;;  %v4623_v28 = vmov 0.0  }
 0x311   : > { %v1020_v56 = vpack.c.bf16 %v1017_v51, %v1016_v12 }
 0x312   : > { %v1011_v8 = vpop.permute.xlu1 %1010 }
 0x313   : > { %1022 = vst.msk [vmem:[#allocation3] sm:$0xff] %vm973_vm5, %v1020_v56  ;;  %v1019_v30 = vadd.f32 %v1011_v8, %v4548_v32  ;;  %v4631_v32 = vmov 0.0  }
 0x315   : > { %v1021_v34 = vpack.c.bf16 %v1019_v30, %v1018_v53 }
 0x317   : > { %1023 = vst.msk [vmem:[#allocation3 + $0x8] sm:$0xff] %vm973_vm5, %v1021_v34 }
 0x318 LB: >> { %2722 = vmatprep.mubr.msk.bf16.mxu0 %vm642_vm2, %v4604_v33  ;;  %s2604_s29 = sshll.u32 %s3814_s26, 4  ;;  %vm1197_vm8 = vcmask 130048   ;;  %s1107_s26 = sadd.s32 1, %s3814_s26   ;;  %s3814_s26 = sphi %s4645_s26, %s1107_s26   ;;  %v3810_v5 = vphi %v4643_v5, %v5488_v5   ;;  %v3806_v54 = vphi %v4641_v54, %v5487_v54   ;;  %v3802_v4 = vphi %v4639_v4, %v5486_v4   ;;  %v3798_v35 = vphi %v4637_v35, %v5485_v35   ;;  %v3794_v40 = vphi %v4635_v40, %v5484_v40   ;;  %v3790_v39 = vphi %v4633_v39, %v5483_v39   ;;  %v3786_v32 = vphi %v4631_v32, %v5482_v32   ;;  %v3782_v20 = vphi %v4629_v20, %v5481_v20   ;;  %v3778_v29 = vphi %v4627_v29, %v5480_v29   ;;  %v3774_v37 = vphi %v4625_v37, %v5479_v37   ;;  %v3770_v28 = vphi %v4623_v28, %v5478_v28   ;;  %v3766_v25 = vphi %v4621_v25, %v5477_v25  }
 0x319   : >> { %s4689_s19 = sshra.s32 %s2604_s29, 4  ;;  %v1187_v45 = vstv %s2604_s29  ;;  %p4744_p12 = scmp.ge.s32.totalorder %s1107_s26, 2  }
 0x31a   : >> { %s2605_s24 = sshll.u32 %s4689_s19, 3  ;;  %v1188_v36 = vadd.s32 %v1187_v45, %v4510_v61  ;;  %v4788_v33 = vmov (%p4744_p12), 0.0   ;;  %s4810_s18 = smov (%p4744_p12), 0  }
 0x31b   : >> { %s1124_s30 = scalar_lea.vmem [#allocation3], %s2605_s24  ;;  %s1127_s11 = scalar_lea.vmem [#allocation4], %s2605_s24 }
 0x31c   : >> { %vm1191_vm6 = vcmp.ge.s32.totalorder %v4518_v13, %v1188_v36  ;;  %vm1189_vm7 = vcmp.ge.s32.totalorder %v4508_v9, %v1188_v36  ;;  %vm1192_vm9 = vcmp.ge.s32.totalorder %v4524_v15, %v1188_v36  ;;  %vm1190_vm10 = vcmp.ge.s32.totalorder %v4515_v11, %v1188_v36  ;;  %v1128_v60 = vld [vmem:[%s1127_s11] sm:$0xff] }
 0x31d   : >> { %2726 = vmatprep.subr.bf16.mxu1 %v1128_v60 }
 0x31e   : >> { %v1125_v41 = vld [vmem:[%s1124_s30] sm:$0xff]  ;;  %2727 = vmatpush3.bf16.msra.mxu1 %v1128_v60 }
 0x31f   : >> { %2776 = vmatprep.subr.msk.bf16.mxu0 %vm642_vm2, %v1125_v41  ;;  %v1136_v50 = vsel %vm642_vm2, %v1125_v41, 0 }
 0x320   : >> { %2721 = vmatpush3.bf16.xpose.msra.mxu0 %v1136_v50 }
 0x327   : >> { %2723 = vmatmul.mubr.msk.bf16.vlgmr.msra.gmra.mrb[0].mxu0 %vm642_vm2, %v4577_v38  ;;  %v4786_v38 = vmov (%p4744_p12), 0.0  }
 0x3fa   : >> { %v2724_v57 = vpop.f32.mrb[0].mxu0 }
 0x3fb   : >> { %v1195_v42 = vsel %vm1191_vm6, %v2724_v57, -1e+30  ;;  %v1172_v43 = vpop.f32.mrb[1].mxu0 }
 0x3fc   : >> { %v1193_v24 = vsel %vm1189_vm7, %v1172_v43, -1e+30  ;;  %v2725_v17 = vpop.f32.mrb[2].mxu0  ;;  %v1204_v44 = vsel %vm1197_vm8, %v1195_v42, -inf }
 0x3fd   : >> { %v1196_v18 = vsel %vm1192_vm9, %v2725_v17, -1e+30  ;;  %1205 = vmax.xlane.f32.xlu1 %v1204_v44  ;;  %v1175_v19 = vpop.f32.mrb[3].mxu0  ;;  %v1198_v46 = vsel %vm1197_vm8, %v1193_v24, -inf }
 0x3fe   : >> { %v1194_v47 = vsel %vm1190_vm10, %v1175_v19, -1e+30  ;;  %1199 = vmax.xlane.f32.xlu0 %v1198_v46  ;;  %v1207_v48 = vsel %vm1197_vm8, %v1196_v18, -inf }
 0x3ff   : >> { %v1201_v58 = vsel %vm1197_vm8, %v1194_v47, -inf }
 0x401   : >> { %1208 = vmax.xlane.f32.xlu1 %v1207_v48 }
 0x402   : >> { %1202 = vmax.xlane.f32.xlu0 %v1201_v58 }
 0x48a   : >> { %v1206_v59 = vpop.xlane.xlu1 %1205 }
 0x48b   : >> { %v4706_v55 = vmax.f32 %v3802_v4, %v1206_v59   ;;  %v1200_v62 = vpop.xlane.xlu0 %1199 }
 0x48c   : >> { %v4709_v10 = vmax.f32 %v3810_v5, %v1200_v62  }
 0x48d   : >> { %v1216_v14 = vsub.f32 %v3802_v4, %v4706_v55  ;;  %v1228_v26 = vsub.f32 %v1195_v42, %v4706_v55 }
 0x48e   : >> { %v1214_v52 = vsub.f32 %v3810_v5, %v4709_v10  ;;  %v1226_v23 = vsub.f32 %v1193_v24, %v4709_v10  ;;  %v1209_v27 = vpop.xlane.xlu1 %1208 }
 0x48f   : >> { %v4718_v22 = vmax.f32 %v3798_v35, %v1209_v27   ;;  %v1203_v16 = vpop.xlane.xlu0 %1202  ;;  %v1234_v49 = vmul.f32 1.442695, %v1228_v26  ;;  %v1222_v36 = vmul.f32 1.442695, %v1216_v14 }
 0x490   : >> { %v1230_v31 = vmul.f32 1.442695, %v1226_v23  ;;  %v4721_v21 = vmax.f32 %v3806_v54, %v1203_v16   ;;  %v1218_v45 = vmul.f32 1.442695, %v1214_v52 }
 0x491   : >> { %v1217_v63 = vsub.f32 %v3798_v35, %v4718_v22  ;;  %v1229_v3 = vsub.f32 %v1196_v18, %v4718_v22 }
 0x492   : >> { %v1215_v12 = vsub.f32 %v3806_v54, %v4721_v21  ;;  %v1227_v51 = vsub.f32 %v1194_v47, %v4721_v21  ;;  %3290 = vpow2.f32 %v1230_v31 }
 0x493   : >> { %v1236_v7 = vmul.f32 1.442695, %v1229_v3  ;;  %3292 = vpow2.f32 %v1234_v49  ;;  %v1224_v42 = vmul.f32 1.442695, %v1217_v63 }
 0x494   : >> { %v1232_v56 = vmul.f32 1.442695, %v1227_v51  ;;  %v1220_v57 = vmul.f32 1.442695, %v1215_v12 }
 0x495   : >> { %3294 = vpow2.f32 %v1236_v7  ;;  %v4780_v7 = vld [vmem:[#allocation2] sm:$0xff] (%p4744_p12) }
 0x496   : >> { %3296 = vpow2.f32 %v1232_v56  ;;  %v4782_v56 = vld [vmem:[#allocation2 + $0x8] sm:$0xff] (%p4744_p12) }
 0x497   : >> { %3298 = vpow2.f32 %v1218_v45  ;;  %v4808_v45 = vmov (%p4744_p12), -1e+30  }
 0x498   : >> { %3300 = vpow2.f32 %v1222_v36 }
 0x499   : >> { %3302 = vpow2.f32 %v1220_v57 }
 0x49a   : >> { %3304 = vpow2.f32 %v1224_v42 }
 0x49c   : >> { %v3291_v8 = vpop.eup %3290 }
 0x49d   : >> { %v1242_v53 = vsel %vm1197_vm8, %v3291_v8, 0.0  ;;  %v3293_v30 = vpop.eup %3292 }
 0x49e   : >> { %1243 = vadd.xlane.f32.xlu0 %v1242_v53  ;;  %v1248_v5 = vsel %vm1197_vm8, %v3293_v30, 0.0 }
 0x49f   : >> { %v3295_v34 = vpop.eup %3294 }
 0x4a0   : >> { %v3297_v35 = vpop.eup %3296  ;;  %v1263_v41 = vpack.c.bf16 %v3295_v34, %v3293_v30  ;;  %v1251_v50 = vsel %vm1197_vm8, %v3295_v34, 0.0 }
 0x4a1   : >> { %v1245_v4 = vsel %vm1197_vm8, %v3297_v35, 0.0  ;;  %v1262_v54 = vpack.c.bf16 %v3297_v35, %v3291_v8  ;;  %v3299_v43 = vpop.eup %3298  ;;  %v5485_v35 = vmov %v4718_v22 }
 0x4a2   : >> { %1246 = vadd.xlane.f32.xlu1 %v1245_v4  ;;  %1249 = vadd.xlane.f32.xlu0 %v1248_v5  ;;  %v3301_v24 = vpop.eup %3300  ;;  %v1238_v17 = vmul.f32 %v3794_v40, %v3299_v43  ;;  %v1258_v40 = vmul.f32 %v3778_v29, %v3299_v43  ;;  %v5486_v4 = vmov %v4706_v55  ;;  %v5488_v5 = vmov %v4709_v10 }
 0x4a3   : >> { %2728 = vmatprep.mubr.msk.bf16.mxu1 %vm1197_vm8, %v1262_v54  ;;  %v3303_v44 = vpop.eup %3302  ;;  %v1240_v47 = vmul.f32 %v3786_v32, %v3301_v24  ;;  %v1260_v23 = vmul.f32 %v3770_v28, %v3301_v24  ;;  %v5487_v54 = vmov %v4721_v21  ;;  %v4800_v35 = vmov (%p4744_p12), 0.0  }
 0x4a4   : >> { %2729 = vmatmul.mubr.msk.bf16.vlgmr.msra.gmra.mrb[0].mxu1 %vm1197_vm8, %v1263_v41  ;;  %v1239_v46 = vmul.f32 %v3790_v39, %v3303_v44  ;;  %v3305_v48 = vpop.eup %3304  ;;  %v1259_v3 = vmul.f32 %v3774_v37, %v3303_v44  ;;  %v4802_v4 = vmov (%p4744_p12), -1e+30   ;;  %v4804_v54 = vmov (%p4744_p12), -1e+30  }
 0x4a5   : >> { %v1241_v14 = vmul.f32 %v3782_v20, %v3305_v48  ;;  %v1261_v39 = vmul.f32 %v3766_v25, %v3305_v48 }
 0x4a6   : >> { %1252 = vadd.xlane.f32.xlu1 %v1251_v50  ;;  %v4806_v50 = vmov (%p4744_p12), -1e+30  }
 0x52b   : >> { %v1244_v18 = vpop.xlane.xlu0 %1243 }
 0x52c   : >> { %v1254_v19 = vadd.f32 %v1244_v18, %v1238_v17  }
 0x52e   : > { %3306 = vrcp.f32 (%p4744_p12), %v1254_v19 }
 0x52f   : >> { %v1247_v58 = vpop.xlane.xlu1 %1246  ;;  %v1250_v60 = vpop.xlane.xlu0 %1249 }
 0x530   : >> { %v1255_v59 = vadd.f32 %v1247_v58, %v1239_v46   ;;  %v1256_v62 = vadd.f32 %v1250_v60, %v1240_v47  }
 0x532   : > { %3308 = vrcp.f32 (%p4744_p12), %v1255_v59 }
 0x533   : >> { %v1253_v26 = vpop.xlane.xlu1 %1252  ;;  %3310 = vrcp.f32 (%p4744_p12), %v1256_v62 }
 0x534   : >> { %v1257_v52 = vadd.f32 %v1253_v26, %v1241_v14  }
 0x536   : >> { %v5481_v20 = vmov %v1257_v52  ;;  %3312 = vrcp.f32 (%p4744_p12), %v1257_v52 }
 0x537   : > { %v4798_v20 = vmov (%p4744_p12), 0.0  }
 0x538   : > { %v3307_v22 = vpop.eup (%p4744_p12), %3306 }
 0x53c   : > { %v3309_v55 = vpop.eup (%p4744_p12), %3308 }
 0x53d   : > { %v3311_v53 = vpop.eup (%p4744_p12), %3310 }
 0x540   : > { %v3313_v30 = vpop.eup (%p4744_p12), %3312 }
 0x577   : >> { %v2730_v27 = vpop.f32.mrb[0].mxu1  ;;  %1106 = sbr.rel (!%p4744_p12) target bundleno = 792 (0x318), region = 153 }
 0x578   : >> { %v1321_v16 = vadd.f32 %v2730_v27, %v1260_v23   ;;  %v1304_v31 = vpop.f32.mrb[1].mxu1 }
 0x579   : >> { %v1319_v63 = vadd.f32 %v1304_v31, %v1258_v40   ;;  %v2731_v32 = vpop.f32.mrb[2].mxu1  ;;  %v5484_v40 = vmov %v1254_v19 }
 0x57a   : >> { %v1322_v49 = vadd.f32 %v2731_v32, %v1261_v39   ;;  %v1307_v12 = vpop.f32.mrb[3].mxu1  ;;  %v5478_v28 = vmov %v1321_v16  ;;  %v5482_v32 = vmov %v1256_v62  ;;  %v5483_v39 = vmov %v1255_v59 }
 0x57b   : >> { %v1320_v51 = vadd.f32 %v1307_v12, %v1259_v3   ;;  %v5480_v29 = vmov %v1319_v63  ;;  %v1327_v8 = vmul.f32 (%p4744_p12), %v3307_v22, %v1319_v63  ;;  %v1329_v34 = vmul.f32 (%p4744_p12), %v3311_v53, %v1321_v16 }
 0x57c   : >> { %v5477_v25 = vmov %v1322_v49  ;;  %v1330_v5 = vmul.f32 (%p4744_p12), %v3313_v30, %v1322_v49  ;;  %v4792_v28 = vmov (%p4744_p12), 0.0   ;;  %v4796_v29 = vmov (%p4744_p12), 0.0  }
 0x57d   : >> { %v5479_v37 = vmov %v1320_v51  ;;  %v1328_v21 = vmul.f32 (%p4744_p12), %v3309_v55, %v1320_v51  ;;  %v4790_v25 = vmov (%p4744_p12), 0.0  }
 0x57e   : > { %v1332_v41 = vpack.c.bf16 %v1330_v5, %v1329_v34  ;;  %v4794_v37 = vmov 0.0  }
 0x57f   : > { %v1331_v10 = vpack.c.bf16 %v1328_v21, %v1327_v8 }
 0x580   : > { %1334 = vst.msk [vmem:[#allocation5 + $0x8] sm:$0xff] %vm642_vm2, %v1332_v41 }
 0x581   : > { %1333 = vst.msk [vmem:[#allocation5] sm:$0xff] %vm642_vm2, %v1331_v10 }
 0x582 LB: >> { %s3984_s26 = smov 120   ;;  %s2611_s29 = sshll.u32 %s3866_s18, 4  ;;  %s3866_s18 = sphi %s4810_s18, %s1342_s18   ;;  %v3862_v45 = vphi %v4808_v45, %v5501_v45   ;;  %v3858_v50 = vphi %v4806_v50, %v5500_v50   ;;  %v3854_v54 = vphi %v4804_v54, %v5499_v54   ;;  %v3850_v4 = vphi %v4802_v4, %v5498_v4   ;;  %v3846_v35 = vphi %v4800_v35, %v5497_v35   ;;  %v3842_v20 = vphi %v4798_v20, %v5496_v20   ;;  %v3838_v29 = vphi %v4796_v29, %v5495_v29   ;;  %v3834_v37 = vphi %v4794_v37, %v5494_v37   ;;  %v3830_v28 = vphi %v4792_v28, %v5493_v28   ;;  %v3826_v25 = vphi %v4790_v25, %v5492_v25   ;;  %v3822_v33 = vphi %v4788_v33, %v5491_v33   ;;  %v3818_v38 = vphi %v4786_v38, %v5490_v38  }
 0x583   : >> { %1368 = vrot.lane.b32.xlu1 %v4782_v56, %s3984_s26  ;;  %s4854_s19 = sshra.s32 %s2611_s29, 4  ;;  %v1431_v17 = vstv %s2611_s29  ;;  %s1342_s18 = sadd.s32 1, %s3866_s18  }
 0x584   : >> { %s2612_s24 = sshll.u32 %s4854_s19, 3  ;;  %v1432_v44 = vadd.s32 %v1431_v17, %v4510_v61  ;;  %p4917_p1 = scmp.ge.s32.totalorder %s1342_s18, 2  }
 0x585   : >> { %s1359_s30 = scalar_lea.vmem [#allocation3], %s2612_s24  ;;  %s1362_s11 = scalar_lea.vmem [#allocation4], %s2612_s24 }
 0x586   : >> { %v1360_v36 = vld [vmem:[%s1359_s30] sm:$0xff]  ;;  %vm1435_vm11 = vcmp.ge.s32.totalorder %v4518_v13, %v1432_v44  ;;  %vm1433_vm12 = vcmp.ge.s32.totalorder %v4508_v9, %v1432_v44  ;;  %vm1436_vm13 = vcmp.ge.s32.totalorder %v4524_v15, %v1432_v44  ;;  %vm1434_vm14 = vcmp.ge.s32.totalorder %v4515_v11, %v1432_v44  ;;  %s4985_s18 = smov (%p4917_p1), 0  }
 0x587   : >> { %1371 = vrot.lane.b32.xlu0 %v1360_v36, %s3984_s26  ;;  %v1363_v23 = vld [vmem:[%s1362_s11] sm:$0xff] }
 0x58b   : >> { %1366 = vrot.lane.b32.xlu0 %v4780_v7, %s3984_s26 }
 0x5f5   : >> { %v1369_v24 = vpop.permute.xlu1 %1368 }
 0x5f9   : >> { %v1372_v57 = vpop.permute.xlu0 %1371 }
 0x5fa   : >> { %2777 = vmatprep.subr.msk.bf16.mxu0 %vm642_vm2, %v1372_v57  ;;  %v1380_v42 = vsel %vm642_vm2, %v1372_v57, 0 }
 0x5fb   : >> { %2733 = vmatpush3.bf16.xpose.msra.mxu0 %v1380_v42 }
 0x5fd   : >> { %v1367_v43 = vpop.permute.xlu0 %1366 }
 0x5fe   : >> { %2734 = vmatprep.mubr.msk.bf16.mxu0 %vm642_vm2, %v1367_v43 }
 0x602   : >> { %2735 = vmatmul.mubr.msk.bf16.vlgmr.msra.gmra.mrb[0].mxu0 %vm642_vm2, %v1369_v24 }
 0x6d5   : >> { %v2736_v18 = vpop.f32.mrb[0].mxu0 }
 0x6d6   : >> { %v1439_v19 = vsel %vm1435_vm11, %v2736_v18, -1e+30  ;;  %v1416_v46 = vpop.f32.mrb[1].mxu0 }
 0x6d7   : >> { %v1437_v47 = vsel %vm1433_vm12, %v1416_v46, -1e+30  ;;  %v2737_v48 = vpop.f32.mrb[2].mxu0  ;;  %v1448_v58 = vsel %vm1197_vm8, %v1439_v19, -inf }
 0x6d8   : >> { %v1440_v60 = vsel %vm1436_vm13, %v2737_v48, -1e+30  ;;  %1449 = vmax.xlane.f32.xlu0 %v1448_v58  ;;  %v1419_v59 = vpop.f32.mrb[3].mxu0  ;;  %v1442_v62 = vsel %vm1197_vm8, %v1437_v47, -inf }
 0x6d9   : >> { %v1438_v14 = vsel %vm1434_vm14, %v1419_v59, -1e+30  ;;  %1443 = vmax.xlane.f32.xlu1 %v1442_v62  ;;  %v1451_v52 = vsel %vm1197_vm8, %v1440_v60, -inf }
 0x6da   : >> { %v1445_v26 = vsel %vm1197_vm8, %v1438_v14, -inf }
 0x6dc   : >> { %1446 = vmax.xlane.f32.xlu0 %v1445_v26 }
 0x6dd   : >> { %1452 = vmax.xlane.f32.xlu1 %v1451_v52 }
 0x6f2   : >> { %1509 = vrot.lane.b32.xlu0 %v1363_v23, %s3984_s26 }
 0x765   : >> { %v1450_v27 = vpop.xlane.xlu0 %1449 }
 0x766   : >> { %v4879_v40 = vmax.f32 %v3854_v54, %v1450_v27   ;;  %v1444_v16 = vpop.xlane.xlu1 %1443 }
 0x767   : >> { %v4882_v31 = vmax.f32 %v3862_v45, %v1444_v16  }
 0x768   : >> { %v1460_v39 = vsub.f32 %v3854_v54, %v4879_v40  ;;  %v1472_v63 = vsub.f32 %v1439_v19, %v4879_v40 }
 0x769   : >> { %v1458_v32 = vsub.f32 %v3862_v45, %v4882_v31  ;;  %v1470_v3 = vsub.f32 %v1437_v47, %v4882_v31  ;;  %v1447_v49 = vpop.xlane.xlu0 %1446 }
 0x76a   : >> { %v1478_v12 = vmul.f32 1.442695, %v1472_v63  ;;  %v4891_v51 = vmax.f32 %v3858_v50, %v1447_v49   ;;  %v1453_v22 = vpop.xlane.xlu1 %1452  ;;  %v1466_v44 = vmul.f32 1.442695, %v1460_v39 }
 0x76b   : >> { %v1474_v55 = vmul.f32 1.442695, %v1470_v3  ;;  %v4894_v8 = vmax.f32 %v3850_v4, %v1453_v22   ;;  %v1462_v18 = vmul.f32 1.442695, %v1458_v32 }
 0x76c   : >> { %v1459_v53 = vsub.f32 %v3858_v50, %v4891_v51  ;;  %v1471_v21 = vsub.f32 %v1438_v14, %v4891_v51  ;;  %3314 = vpow2.f32 %v1478_v12 }
 0x76d   : >> { %v1461_v30 = vsub.f32 %v3850_v4, %v4894_v8  ;;  %v1473_v34 = vsub.f32 %v1440_v60, %v4894_v8  ;;  %v1510_v10 = vpop.permute.xlu0 %1509  ;;  %3316 = vpow2.f32 %v1474_v55 }
 0x76e   : >> { %v1476_v5 = vmul.f32 1.442695, %v1471_v21  ;;  %2738 = vmatprep.subr.bf16.mxu1 %v1510_v10  ;;  %v1464_v19 = vmul.f32 1.442695, %v1459_v53 }
 0x76f   : >> { %v1480_v41 = vmul.f32 1.442695, %v1473_v34  ;;  %2739 = vmatpush3.bf16.msra.mxu1 %v1510_v10  ;;  %v1468_v46 = vmul.f32 1.442695, %v1461_v30 }
 0x770   : >> { %3318 = vpow2.f32 %v1476_v5  ;;  %v4953_v5 = vld [vmem:[#allocation2] sm:$0xff] (%p4917_p1) }
 0x771   : >> { %3320 = vpow2.f32 %v1480_v41 }
 0x772   : >> { %3322 = vpow2.f32 %v1466_v44  ;;  %v4979_v44 = vmov (%p4917_p1), -1e+30  }
 0x773   : >> { %3324 = vpow2.f32 %v1462_v18  ;;  %v4981_v18 = vmov (%p4917_p1), -1e+30  }
 0x774   : >> { %3326 = vpow2.f32 %v1464_v19  ;;  %v4983_v19 = vmov (%p4917_p1), -1e+30  }
 0x775   : >> { %3328 = vpow2.f32 %v1468_v46 }
 0x776   : >> { %v3315_v54 = vpop.eup %3314 }
 0x777   : >> { %v1492_v45 = vsel %vm1197_vm8, %v3315_v54, 0.0  ;;  %v3317_v50 = vpop.eup %3316 }
 0x778   : >> { %1493 = vadd.xlane.f32.xlu1 %v1492_v45  ;;  %v1486_v57 = vsel %vm1197_vm8, %v3317_v50, 0.0  ;;  %v5501_v45 = vmov %v4882_v31 }
 0x77a   : >> { %v3319_v36 = vpop.eup %3318 }
 0x77b   : >> { %v1506_v42 = vpack.c.bf16 %v3319_v36, %v3317_v50  ;;  %v3321_v4 = vpop.eup %3320  ;;  %v1489_v24 = vsel %vm1197_vm8, %v3319_v36, 0.0  ;;  %v5500_v50 = vmov %v4891_v51 }
 0x77c   : >> { %1487 = vadd.xlane.f32.xlu1 %v1486_v57  ;;  %v1507_v43 = vpack.c.bf16 %v3321_v4, %v3315_v54  ;;  %v1495_v17 = vsel %vm1197_vm8, %v3321_v4, 0.0  ;;  %v3323_v47 = vpop.eup %3322  ;;  %v5498_v4 = vmov %v4894_v8  ;;  %v5499_v54 = vmov %v4879_v40  ;;  %v4955_v8 = vld [vmem:[#allocation2 + $0x8] sm:$0xff] (%p4917_p1) }
 0x77d   : >> { %2740 = vmatprep.mubr.msk.bf16.mxu1 %vm1197_vm8, %v1506_v42  ;;  %v1484_v48 = vmul.f32 %v3838_v29, %v3323_v47  ;;  %v3325_v58 = vpop.eup %3324  ;;  %v1504_v49 = vmul.f32 %v3822_v33, %v3323_v47  ;;  %v4971_v54 = vmov (%p4917_p1), 0.0   ;;  %v4973_v50 = vmov (%p4917_p1), 0.0  }
 0x77e   : >> { %2741 = vmatmul.mubr.msk.bf16.vlgmr.msra.gmra.mrb[0].mxu1 %vm1197_vm8, %v1507_v43  ;;  %v1482_v62 = vmul.f32 %v3846_v35, %v3325_v58  ;;  %v3327_v14 = vpop.eup %3326  ;;  %v1502_v12 = vmul.f32 %v3830_v28, %v3325_v58  ;;  %v4975_v4 = vmov (%p4917_p1), 0.0  }
 0x77f   : >> { %v1483_v23 = vmul.f32 %v3842_v20, %v3327_v14  ;;  %v3329_v27 = vpop.eup %3328  ;;  %v1503_v20 = vmul.f32 %v3826_v25, %v3327_v14 }
 0x780   : >> { %1490 = vadd.xlane.f32.xlu1 %v1489_v24  ;;  %v1485_v63 = vmul.f32 %v3834_v37, %v3329_v27  ;;  %v1505_v35 = vmul.f32 %v3818_v38, %v3329_v27 }
 0x784   : >> { %1496 = vadd.xlane.f32.xlu1 %v1495_v17  ;;  %v4977_v17 = vmov (%p4917_p1), -1e+30  }
 0x805   : >> { %v1494_v60 = vpop.xlane.xlu1 %1493 }
 0x806   : >> { %v1500_v59 = vadd.f32 %v1494_v60, %v1484_v48  }
 0x809   : >> { %v1488_v26 = vpop.xlane.xlu1 %1487 }
 0x80a   : >> { %v1498_v52 = vadd.f32 %v1488_v26, %v1482_v62  }
 0x80c   : > { %3330 = vrcp.f32 (%p4917_p1), %v1498_v52 }
 0x80d   : >> { %v1491_v16 = vpop.xlane.xlu1 %1490 }
 0x80e   : >> { %v1499_v39 = vadd.f32 %v1491_v16, %v1483_v23  }
 0x810   : > { %3332 = vrcp.f32 (%p4917_p1), %v1499_v39 }
 0x811   : >> { %v1497_v32 = vpop.xlane.xlu1 %1496  ;;  %3334 = vrcp.f32 (%p4917_p1), %v1500_v59 }
 0x812   : >> { %v1501_v3 = vadd.f32 %v1497_v32, %v1485_v63  }
 0x814   : >> { %v5494_v37 = vmov %v1501_v3  ;;  %3336 = vrcp.f32 (%p4917_p1), %v1501_v3 }
 0x815   : > { %v4969_v37 = vmov (%p4917_p1), 0.0  }
 0x816   : > { %v3331_v41 = vpop.eup (%p4917_p1), %3330 }
 0x81a   : > { %v3333_v40 = vpop.eup (%p4917_p1), %3332 }
 0x81b   : > { %v3335_v36 = vpop.eup (%p4917_p1), %3334 }
 0x81e   : > { %v3337_v57 = vpop.eup (%p4917_p1), %3336 }
 0x851   : >> { %v2742_v29 = vpop.f32.mrb[0].mxu1  ;;  %1341 = sbr.rel (!%p4917_p1) target bundleno = 1410 (0x582), region = 164 }
 0x852   : >> { %v1569_v22 = vadd.f32 %v2742_v29, %v1504_v49   ;;  %v1552_v55 = vpop.f32.mrb[1].mxu1  ;;  %v5495_v29 = vmov %v1500_v59 }
 0x853   : >> { %v1567_v53 = vadd.f32 %v1552_v55, %v1502_v12   ;;  %v2743_v21 = vpop.f32.mrb[2].mxu1 }
 0x854   : >> { %v1570_v30 = vadd.f32 %v2743_v21, %v1505_v35   ;;  %v1555_v34 = vpop.f32.mrb[3].mxu1  ;;  %v5491_v33 = vmov %v1569_v22  ;;  %v5497_v35 = vmov %v1498_v52  ;;  %v1577_v42 = vmul.f32 (%p4917_p1), %v3335_v36, %v1569_v22 }
 0x855   : >> { %v1568_v10 = vadd.f32 %v1555_v34, %v1503_v20   ;;  %v5493_v28 = vmov %v1567_v53  ;;  %v5496_v20 = vmov %v1499_v39  ;;  %v1575_v45 = vmul.f32 (%p4917_p1), %v3331_v41, %v1567_v53 }
 0x856   : >> { %v5490_v38 = vmov %v1570_v30  ;;  %v1578_v43 = vmul.f32 (%p4917_p1), %v3337_v57, %v1570_v30  ;;  %v4963_v33 = vmov (%p4917_p1), 0.0   ;;  %v4967_v28 = vmov (%p4917_p1), 0.0  }
 0x857   : >> { %v5492_v25 = vmov %v1568_v10  ;;  %v1576_v51 = vmul.f32 (%p4917_p1), %v3333_v40, %v1568_v10  ;;  %v4961_v38 = vmov (%p4917_p1), 0.0  }
 0x858   : > { %v1580_v24 = vpack.c.bf16 %v1578_v43, %v1577_v42  ;;  %v4965_v25 = vmov 0.0  }
 0x859   : > { %v1579_v31 = vpack.c.bf16 %v1576_v51, %v1575_v45 }
 0x85b   : > { %1583 = vrot.lane.b32.xlu0 %v1579_v31, %s3976_s25 }
 0x85f   : > { %1585 = vrot.lane.b32.xlu0 %v1580_v24, %s3976_s25 }
 0x8cd   : > { %v1584_v7 = vpop.permute.xlu0 %1583 }
 0x8ce   : > { %1589 = vst.msk [vmem:[#allocation5] sm:$0xff] %vm755_vm3, %v1584_v7 }
 0x8d1   : > { %v1586_v56 = vpop.permute.xlu0 %1585 }
 0x8d2   : > { %1590 = vst.msk [vmem:[#allocation5 + $0x8] sm:$0xff] %vm755_vm3, %v1586_v56 }
 0x8d3 LB: >> { %s3985_s26 = smov 112   ;;  %s2618_s29 = sshll.u32 %s3918_s18, 4  ;;  %s3918_s18 = sphi %s4985_s18, %s1598_s18   ;;  %v3914_v19 = vphi %v4983_v19, %v5514_v19   ;;  %v3910_v18 = vphi %v4981_v18, %v5513_v18   ;;  %v3906_v44 = vphi %v4979_v44, %v5512_v44   ;;  %v3902_v17 = vphi %v4977_v17, %v5511_v17   ;;  %v3898_v4 = vphi %v4975_v4, %v5510_v4   ;;  %v3894_v50 = vphi %v4973_v50, %v5509_v50   ;;  %v3890_v54 = vphi %v4971_v54, %v5508_v54   ;;  %v3886_v37 = vphi %v4969_v37, %v5507_v37   ;;  %v3882_v28 = vphi %v4967_v28, %v5506_v28   ;;  %v3878_v25 = vphi %v4965_v25, %v5505_v25   ;;  %v3874_v33 = vphi %v4963_v33, %v5504_v33   ;;  %v3870_v38 = vphi %v4961_v38, %v5503_v38  }
 0x8d4   : >> { %1624 = vrot.lane.b32.xlu1 %v4955_v8, %s3985_s26  ;;  %s5029_s19 = sshra.s32 %s2618_s29, 4  ;;  %v1687_v59 = vstv %s2618_s29  ;;  %s1598_s18 = sadd.s32 1, %s3918_s18  }
 0x8d5   : >> { %s2619_s24 = sshll.u32 %s5029_s19, 3  ;;  %v1688_v62 = vadd.s32 %v1687_v59, %v4510_v61  ;;  %p5092_p2 = scmp.ge.s32.totalorder %s1598_s18, 2  }
 0x8d6   : >> { %s1615_s30 = scalar_lea.vmem [#allocation3], %s2619_s24  ;;  %s1618_s11 = scalar_lea.vmem [#allocation4], %s2619_s24 }
 0x8d7   : >> { %v1616_v46 = vld [vmem:[%s1615_s30] sm:$0xff]  ;;  %vm1691_vm15 = vcmp.ge.s32.totalorder %v4518_v13, %v1688_v62  ;;  %vm1689_vm1 = vcmp.ge.s32.totalorder %v4508_v9, %v1688_v62  ;;  %vm1692_vm3 = vcmp.ge.s32.totalorder %v4524_v15, %v1688_v62  ;;  %vm1690_vm6 = vcmp.ge.s32.totalorder %v4515_v11, %v1688_v62 }
 0x8d8   : >> { %1627 = vrot.lane.b32.xlu0 %v1616_v46, %s3985_s26  ;;  %v1619_v12 = vld [vmem:[%s1618_s11] sm:$0xff] }
 0x8dc   : >> { %1622 = vrot.lane.b32.xlu0 %v4953_v5, %s3985_s26 }
 0x946   : >> { %v1625_v60 = vpop.permute.xlu1 %1624 }
 0x94a   : >> { %v1628_v47 = vpop.permute.xlu0 %1627 }
 0x94b   : >> { %2778 = vmatprep.subr.msk.bf16.mxu0 %vm642_vm2, %v1628_v47  ;;  %v1636_v48 = vsel %vm642_vm2, %v1628_v47, 0 }
 0x94c   : >> { %2745 = vmatpush3.bf16.xpose.msra.mxu0 %v1636_v48 }
 0x94e   : >> { %v1623_v58 = vpop.permute.xlu0 %1622 }
 0x94f   : >> { %2746 = vmatprep.mubr.msk.bf16.mxu0 %vm642_vm2, %v1623_v58 }
 0x953   : >> { %2747 = vmatmul.mubr.msk.bf16.vlgmr.msra.gmra.mrb[0].mxu0 %vm642_vm2, %v1625_v60 }
 0xa26   : >> { %v2748_v14 = vpop.f32.mrb[0].mxu0 }
 0xa27   : >> { %v1695_v26 = vsel %vm1691_vm15, %v2748_v14, -1e+30  ;;  %v1672_v52 = vpop.f32.mrb[1].mxu0 }
 0xa28   : >> { %v1693_v23 = vsel %vm1689_vm1, %v1672_v52, -1e+30  ;;  %v2749_v27 = vpop.f32.mrb[2].mxu0  ;;  %v1704_v16 = vsel %vm1197_vm8, %v1695_v26, -inf }
 0xa29   : >> { %v1696_v39 = vsel %vm1692_vm3, %v2749_v27, -1e+30  ;;  %1705 = vmax.xlane.f32.xlu0 %v1704_v16  ;;  %v1675_v63 = vpop.f32.mrb[3].mxu0  ;;  %v1698_v32 = vsel %vm1197_vm8, %v1693_v23, -inf }
 0xa2a   : >> { %v1694_v3 = vsel %vm1690_vm6, %v1675_v63, -1e+30  ;;  %1699 = vmax.xlane.f32.xlu1 %v1698_v32  ;;  %v1707_v29 = vsel %vm1197_vm8, %v1696_v39, -inf }
 0xa2b   : >> { %v1701_v49 = vsel %vm1197_vm8, %v1694_v3, -inf }
 0xa2d   : >> { %1702 = vmax.xlane.f32.xlu0 %v1701_v49 }
 0xa2e   : >> { %1708 = vmax.xlane.f32.xlu1 %v1707_v29 }
 0xa43   : >> { %1765 = vrot.lane.b32.xlu0 %v1619_v12, %s3985_s26 }
 0xab6   : >> { %v1706_v22 = vpop.xlane.xlu0 %1705 }
 0xab7   : >> { %v5054_v55 = vmax.f32 %v3906_v44, %v1706_v22   ;;  %v1700_v35 = vpop.xlane.xlu1 %1699 }
 0xab8   : >> { %v5057_v53 = vmax.f32 %v3914_v19, %v1700_v35  }
 0xab9   : >> { %v1716_v21 = vsub.f32 %v3906_v44, %v5054_v55  ;;  %v1728_v20 = vsub.f32 %v1695_v26, %v5054_v55 }
 0xaba   : >> { %v1714_v30 = vsub.f32 %v3914_v19, %v5057_v53  ;;  %v1726_v34 = vsub.f32 %v1693_v23, %v5057_v53  ;;  %v1703_v10 = vpop.xlane.xlu0 %1702 }
 0xabb   : >> { %v1734_v41 = vmul.f32 1.442695, %v1728_v20  ;;  %v5066_v40 = vmax.f32 %v3910_v18, %v1703_v10   ;;  %v1709_v45 = vpop.xlane.xlu1 %1708  ;;  %v1722_v62 = vmul.f32 1.442695, %v1716_v21 }
 0xabc   : >> { %v1730_v36 = vmul.f32 1.442695, %v1726_v34  ;;  %v5069_v51 = vmax.f32 %v3902_v17, %v1709_v45   ;;  %v1718_v14 = vmul.f32 1.442695, %v1714_v30 }
 0xabd   : >> { %v1715_v57 = vsub.f32 %v3910_v18, %v5066_v40  ;;  %v1727_v42 = vsub.f32 %v1694_v3, %v5066_v40  ;;  %3338 = vpow2.f32 %v1734_v41 }
 0xabe   : >> { %v1717_v31 = vsub.f32 %v3902_v17, %v5069_v51  ;;  %v1729_v43 = vsub.f32 %v1696_v39, %v5069_v51  ;;  %v1766_v24 = vpop.permute.xlu0 %1765  ;;  %3340 = vpow2.f32 %v1730_v36 }
 0xabf   : >> { %v1732_v7 = vmul.f32 1.442695, %v1727_v42  ;;  %2750 = vmatprep.subr.bf16.mxu1 %v1766_v24  ;;  %v1720_v26 = vmul.f32 1.442695, %v1715_v57 }
 0xac0   : >> { %v1736_v56 = vmul.f32 1.442695, %v1729_v43  ;;  %2751 = vmatpush3.bf16.msra.mxu1 %v1766_v24  ;;  %v1724_v52 = vmul.f32 1.442695, %v1717_v31 }
 0xac1   : >> { %3342 = vpow2.f32 %v1732_v7  ;;  %v5128_v7 = vld [vmem:[#allocation2] sm:$0xff] (%p5092_p2) }
 0xac2   : >> { %3344 = vpow2.f32 %v1736_v56 }
 0xac3   : >> { %3346 = vpow2.f32 %v1722_v62  ;;  %v5154_v62 = vmov (%p5092_p2), -1e+30  }
 0xac4   : >> { %3348 = vpow2.f32 %v1718_v14  ;;  %v5156_v14 = vmov (%p5092_p2), -1e+30  }
 0xac5   : >> { %3350 = vpow2.f32 %v1720_v26  ;;  %v5158_v26 = vmov (%p5092_p2), -1e+30  }
 0xac6   : >> { %3352 = vpow2.f32 %v1724_v52 }
 0xac7   : >> { %v3339_v44 = vpop.eup %3338 }
 0xac8   : >> { %v1748_v19 = vsel %vm1197_vm8, %v3339_v44, 0.0  ;;  %v3341_v18 = vpop.eup %3340 }
 0xac9   : >> { %1749 = vadd.xlane.f32.xlu1 %v1748_v19  ;;  %v1742_v47 = vsel %vm1197_vm8, %v3341_v18, 0.0  ;;  %v5514_v19 = vmov %v5057_v53 }
 0xacb   : >> { %v3343_v46 = vpop.eup %3342 }
 0xacc   : >> { %v1762_v48 = vpack.c.bf16 %v3343_v46, %v3341_v18  ;;  %v3345_v17 = vpop.eup %3344  ;;  %v1745_v60 = vsel %vm1197_vm8, %v3343_v46, 0.0  ;;  %v5513_v18 = vmov %v5066_v40 }
 0xacd   : >> { %1743 = vadd.xlane.f32.xlu1 %v1742_v47  ;;  %v1763_v58 = vpack.c.bf16 %v3345_v17, %v3339_v44  ;;  %v1751_v59 = vsel %vm1197_vm8, %v3345_v17, 0.0  ;;  %v3347_v23 = vpop.eup %3346  ;;  %v5511_v17 = vmov %v5069_v51  ;;  %v5512_v44 = vmov %v5054_v55  ;;  %v5130_v51 = vld [vmem:[#allocation2 + $0x8] sm:$0xff] (%p5092_p2) }
 0xace   : >> { %2752 = vmatprep.mubr.msk.bf16.mxu1 %vm1197_vm8, %v1762_v48  ;;  %v1740_v27 = vmul.f32 %v3890_v54, %v3347_v23  ;;  %v3349_v16 = vpop.eup %3348  ;;  %v1760_v10 = vmul.f32 %v3874_v33, %v3347_v23  ;;  %v5146_v44 = vmov (%p5092_p2), 0.0   ;;  %v5148_v18 = vmov (%p5092_p2), 0.0  }
 0xacf   : >> { %2753 = vmatmul.mubr.msk.bf16.vlgmr.msra.gmra.mrb[0].mxu1 %vm1197_vm8, %v1763_v58  ;;  %v1738_v32 = vmul.f32 %v3898_v4, %v3349_v16  ;;  %v3351_v3 = vpop.eup %3350  ;;  %v1758_v41 = vmul.f32 %v3882_v28, %v3349_v16  ;;  %v5150_v17 = vmov (%p5092_p2), 0.0  }
 0xad0   : >> { %v1739_v12 = vmul.f32 %v3894_v50, %v3351_v3  ;;  %v3353_v22 = vpop.eup %3352  ;;  %v1759_v50 = vmul.f32 %v3878_v25, %v3351_v3 }
 0xad1   : >> { %1746 = vadd.xlane.f32.xlu1 %v1745_v60  ;;  %v1741_v20 = vmul.f32 %v3886_v37, %v3353_v22  ;;  %v1761_v4 = vmul.f32 %v3870_v38, %v3353_v22 }
 0xad5   : >> { %1752 = vadd.xlane.f32.xlu1 %v1751_v59  ;;  %v5152_v59 = vmov (%p5092_p2), -1e+30  }
 0xb56   : >> { %v1750_v39 = vpop.xlane.xlu1 %1749 }
 0xb57   : >> { %v1756_v63 = vadd.f32 %v1750_v39, %v1740_v27  }
 0xb5a   : >> { %v1744_v49 = vpop.xlane.xlu1 %1743 }
 0xb5b   : >> { %v1754_v29 = vadd.f32 %v1744_v49, %v1738_v32  }
 0xb5d   : > { %3354 = vrcp.f32 (%p5092_p2), %v1754_v29 }
 0xb5e   : >> { %v1747_v35 = vpop.xlane.xlu1 %1746 }
 0xb5f   : >> { %v1755_v21 = vadd.f32 %v1747_v35, %v1739_v12  }
 0xb61   : > { %3356 = vrcp.f32 (%p5092_p2), %v1755_v21 }
 0xb62   : >> { %v1753_v30 = vpop.xlane.xlu1 %1752  ;;  %3358 = vrcp.f32 (%p5092_p2), %v1756_v63 }
 0xb63   : >> { %v1757_v34 = vadd.f32 %v1753_v30, %v1741_v20  }
 0xb65   : >> { %v5507_v37 = vmov %v1757_v34  ;;  %3360 = vrcp.f32 (%p5092_p2), %v1757_v34 }
 0xb66   : > { %v5144_v37 = vmov (%p5092_p2), 0.0  }
 0xb67   : > { %v3355_v56 = vpop.eup (%p5092_p2), %3354 }
 0xb6b   : > { %v3357_v55 = vpop.eup (%p5092_p2), %3356 }
 0xb6c   : > { %v3359_v46 = vpop.eup (%p5092_p2), %3358 }
 0xb6f   : > { %v3361_v47 = vpop.eup (%p5092_p2), %3360 }
 0xba2   : >> { %v2754_v54 = vpop.f32.mrb[0].mxu1  ;;  %1597 = sbr.rel (!%p5092_p2) target bundleno = 2259 (0x8d3), region = 175 }
 0xba3   : >> { %v1825_v45 = vadd.f32 %v2754_v54, %v1760_v10   ;;  %v1808_v36 = vpop.f32.mrb[1].mxu1  ;;  %v5508_v54 = vmov %v1756_v63 }
 0xba4   : >> { %v1823_v57 = vadd.f32 %v1808_v36, %v1758_v41   ;;  %v2755_v42 = vpop.f32.mrb[2].mxu1 }
 0xba5   : >> { %v1826_v31 = vadd.f32 %v2755_v42, %v1761_v4   ;;  %v1811_v43 = vpop.f32.mrb[3].mxu1  ;;  %v5504_v33 = vmov %v1825_v45  ;;  %v5510_v4 = vmov %v1754_v29  ;;  %v1833_v48 = vmul.f32 (%p5092_p2), %v3359_v46, %v1825_v45 }
 0xba6   : >> { %v1824_v24 = vadd.f32 %v1811_v43, %v1759_v50   ;;  %v5506_v28 = vmov %v1823_v57  ;;  %v5509_v50 = vmov %v1755_v21  ;;  %v1831_v19 = vmul.f32 (%p5092_p2), %v3355_v56, %v1823_v57 }
 0xba7   : >> { %v5503_v38 = vmov %v1826_v31  ;;  %v1834_v58 = vmul.f32 (%p5092_p2), %v3361_v47, %v1826_v31  ;;  %v5138_v33 = vmov (%p5092_p2), 0.0   ;;  %v5142_v28 = vmov (%p5092_p2), 0.0  }
 0xba8   : >> { %v5505_v25 = vmov %v1824_v24  ;;  %v1832_v40 = vmul.f32 (%p5092_p2), %v3357_v55, %v1824_v24  ;;  %v5136_v38 = vmov (%p5092_p2), 0.0  }
 0xba9   : > { %v1836_v60 = vpack.c.bf16 %v1834_v58, %v1833_v48  ;;  %v5140_v25 = vmov 0.0  }
 0xbaa   : > { %v1835_v53 = vpack.c.bf16 %v1832_v40, %v1831_v19 }
 0xbac   : > { %1839 = vrot.lane.b32.xlu0 %v1835_v53, %s3977_s21 }
 0xbb0   : > { %1841 = vrot.lane.b32.xlu0 %v1836_v60, %s3977_s21  ;;  %s5160_s21 = smov 0  }
 0xc1e   : > { %v1840_v5 = vpop.permute.xlu0 %1839 }
 0xc1f   : > { %1845 = vst.msk [vmem:[#allocation5] sm:$0xff] %vm864_vm4, %v1840_v5 }
 0xc22   : > { %v1842_v8 = vpop.permute.xlu0 %1841 }
 0xc23   : > { %1846 = vst.msk [vmem:[#allocation5 + $0x8] sm:$0xff] %vm864_vm4, %v1842_v8 }
 0xc24 LB: >> { %s3986_s18 = smov 104   ;;  %s2625_s26 = sshll.u32 %s3970_s21, 4  ;;  %s3970_s21 = sphi %s5160_s21, %s1854_s21   ;;  %v3966_v26 = vphi %v5158_v26, %v5527_v26   ;;  %v3962_v14 = vphi %v5156_v14, %v5526_v14   ;;  %v3958_v62 = vphi %v5154_v62, %v5525_v62   ;;  %v3954_v59 = vphi %v5152_v59, %v5524_v59   ;;  %v3950_v17 = vphi %v5150_v17, %v5523_v17   ;;  %v3946_v18 = vphi %v5148_v18, %v5522_v18   ;;  %v3942_v44 = vphi %v5146_v44, %v5521_v44   ;;  %v3938_v37 = vphi %v5144_v37, %v5520_v37   ;;  %v3934_v28 = vphi %v5142_v28, %v5519_v28   ;;  %v3930_v25 = vphi %v5140_v25, %v5518_v25   ;;  %v3926_v33 = vphi %v5138_v33, %v5517_v33   ;;  %v3922_v38 = vphi %v5136_v38, %v5516_v38  }
 0xc25   : >> { %1880 = vrot.lane.b32.xlu1 %v5130_v51, %s3986_s18  ;;  %s5204_s29 = sshra.s32 %s2625_s26, 4  ;;  %v1943_v63 = vstv %s2625_s26  ;;  %s1854_s21 = sadd.s32 1, %s3970_s21  }
 0xc26   : >> { %s2626_s19 = sshll.u32 %s5204_s29, 3  ;;  %v1944_v32 = vadd.s32 %v1943_v63, %v4510_v61  ;;  %p5267_p3 = scmp.ge.s32.totalorder %s1854_s21, 2  }
 0xc27   : >> { %s1871_s24 = scalar_lea.vmem [#allocation3], %s2626_s19  ;;  %s1874_s30 = scalar_lea.vmem [#allocation4], %s2626_s19 }
 0xc28   : >> { %v1872_v52 = vld [vmem:[%s1871_s24] sm:$0xff]  ;;  %vm1947_vm4 = vcmp.ge.s32.totalorder %v4518_v13, %v1944_v32  ;;  %vm1945_vm7 = vcmp.ge.s32.totalorder %v4508_v9, %v1944_v32  ;;  %vm1948_vm9 = vcmp.ge.s32.totalorder %v4524_v15, %v1944_v32  ;;  %vm1946_vm10 = vcmp.ge.s32.totalorder %v4515_v11, %v1944_v32  ;;  %s2267_s26 = sshll.u32 (%p5267_p3), %s4615_s27, 4  ;;  %s2249_s29 = scalar_lea.sflag (%p5267_p3), [#allocation8], %s4192_s12  ;;  %s5352_s26 = int_to_ptr.vmem [resolvable:$true] %s2267_s26 }
 0xc29   : >> { %1883 = vrot.lane.b32.xlu0 %v1872_v52, %s3986_s18  ;;  %v1875_v41 = vld [vmem:[%s1874_s30] sm:$0xff]  ;;  %s3452_s19 = scalar_lea.vmem (%p5267_p3), %s5352_s26, 512  ;;  %p5528_p7 = scmp.ne.s32.totalorder (%p5267_p3), %s5466_s23, 0 }
 0xc2a   : > { %p3453_p4 = scmp.ne.s32.totalorder (%p5267_p3), %s5352_s26, %s3452_s19  ;;  %s3987_s24 = smov (%p5267_p3), [#allocation11]  }
 0xc2b   : > { %s3456_s30 = sshll.u32 (%p5267_p3), %s3987_s24, 4  ;;  %s3457_s30 = int_to_ptr.vmem [resolvable:$false] %s3456_s30 }
 0xc2c   : > { %p3454_p8 = pnand (%p5267_p3), %p3453_p4, %p5528_p7  ;;  %s3458_s11 = scalar_lea.vmem (%p5267_p3), %s3457_s30, 1024 }
 0xc2d   : >> { %1878 = vrot.lane.b32.xlu0 %v5128_v7, %s3986_s18  ;;  %p3459_p13 = scmp.lt.s32.totalorder (%p5267_p3), %s5352_s26, %s3457_s30  ;;  %p3460_p5 = scmp.lt.s32.totalorder (%p5267_p3), %s3458_s11, %s3452_s19 }
 0xc2e   : > { %p3455_p11 = pneg (%p5267_p3), %p3454_p8 }
 0xc2f   : > { %p3461_p0 = por (%p5267_p3), %p3460_p5, %p3459_p13 }
 0xc31   : > { %p3462_p6 = pnand (%p5267_p3), %p3461_p0, %p3455_p11 }
 0xc97   : >> { %v1881_v39 = vpop.permute.xlu1 %1880 }
 0xc9b   : >> { %v1884_v23 = vpop.permute.xlu0 %1883 }
 0xc9c   : >> { %2779 = vmatprep.subr.msk.bf16.mxu0 %vm642_vm2, %v1884_v23  ;;  %v1892_v27 = vsel %vm642_vm2, %v1884_v23, 0 }
 0xc9d   : >> { %2757 = vmatpush3.bf16.xpose.msra.mxu0 %v1892_v27 }
 0xc9f   : >> { %v1879_v16 = vpop.permute.xlu0 %1878 }
 0xca0   : >> { %2758 = vmatprep.mubr.msk.bf16.mxu0 %vm642_vm2, %v1879_v16 }
 0xca4   : >> { %2759 = vmatmul.mubr.msk.bf16.vlgmr.msra.gmra.mrb[0].mxu0 %vm642_vm2, %v1881_v39 }
 0xd77   : >> { %v2760_v3 = vpop.f32.mrb[0].mxu0 }
 0xd78   : >> { %v1951_v49 = vsel %vm1947_vm4, %v2760_v3, -1e+30  ;;  %v1928_v29 = vpop.f32.mrb[1].mxu0 }
 0xd79   : >> { %v1949_v12 = vsel %vm1945_vm7, %v1928_v29, -1e+30  ;;  %v2761_v22 = vpop.f32.mrb[2].mxu0  ;;  %v1960_v35 = vsel %vm1197_vm8, %v1951_v49, -inf }
 0xd7a   : >> { %v1952_v21 = vsel %vm1948_vm9, %v2761_v22, -1e+30  ;;  %1961 = vmax.xlane.f32.xlu0 %v1960_v35  ;;  %v1931_v20 = vpop.f32.mrb[3].mxu0  ;;  %v1954_v30 = vsel %vm1197_vm8, %v1949_v12, -inf }
 0xd7b   : >> { %v1950_v34 = vsel %vm1946_vm10, %v1931_v20, -1e+30  ;;  %1955 = vmax.xlane.f32.xlu1 %v1954_v30  ;;  %v1963_v54 = vsel %vm1197_vm8, %v1952_v21, -inf }
 0xd7c   : >> { %v1957_v10 = vsel %vm1197_vm8, %v1950_v34, -inf }
 0xd7e   : >> { %1958 = vmax.xlane.f32.xlu0 %v1957_v10 }
 0xd7f   : >> { %1964 = vmax.xlane.f32.xlu1 %v1963_v54 }
 0xd94   : >> { %2021 = vrot.lane.b32.xlu0 %v1875_v41, %s3986_s18 }
 0xe07   : >> { %v1962_v45 = vpop.xlane.xlu0 %1961 }
 0xe08   : >> { %v5229_v36 = vmax.f32 %v3958_v62, %v1962_v45   ;;  %v1956_v4 = vpop.xlane.xlu1 %1955 }
 0xe09   : >> { %v5232_v57 = vmax.f32 %v3966_v26, %v1956_v4  }
 0xe0a   : >> { %v1972_v42 = vsub.f32 %v3958_v62, %v5229_v36  ;;  %v1984_v50 = vsub.f32 %v1951_v49, %v5229_v36 }
 0xe0b   : >> { %v1970_v31 = vsub.f32 %v3966_v26, %v5232_v57  ;;  %v1982_v43 = vsub.f32 %v1949_v12, %v5232_v57  ;;  %v1959_v24 = vpop.xlane.xlu0 %1958 }
 0xe0c   : >> { %v1990_v56 = vmul.f32 1.442695, %v1984_v50  ;;  %v5241_v55 = vmax.f32 %v3962_v14, %v1959_v24   ;;  %v1965_v19 = vpop.xlane.xlu1 %1964  ;;  %v1978_v32 = vmul.f32 1.442695, %v1972_v42 }
 0xe0d   : >> { %v1986_v46 = vmul.f32 1.442695, %v1982_v43  ;;  %v5244_v40 = vmax.f32 %v3954_v59, %v1965_v19   ;;  %v1974_v3 = vmul.f32 1.442695, %v1970_v31 }
 0xe0e   : >> { %v1971_v47 = vsub.f32 %v3962_v14, %v5241_v55  ;;  %v1983_v48 = vsub.f32 %v1950_v34, %v5241_v55  ;;  %3362 = vpow2.f32 %v1990_v56 }
 0xe0f   : >> { %v1973_v53 = vsub.f32 %v3954_v59, %v5244_v40  ;;  %v1985_v58 = vsub.f32 %v1952_v21, %v5244_v40  ;;  %v2022_v60 = vpop.permute.xlu0 %2021  ;;  %3364 = vpow2.f32 %v1986_v46 }
 0xe10   : >> { %v1988_v5 = vmul.f32 1.442695, %v1983_v48  ;;  %2762 = vmatprep.subr.bf16.mxu1 %v2022_v60  ;;  %v1976_v49 = vmul.f32 1.442695, %v1971_v47 }
 0xe11   : >> { %v1992_v8 = vmul.f32 1.442695, %v1985_v58  ;;  %2763 = vmatpush3.bf16.msra.mxu1 %v2022_v60  ;;  %v1980_v29 = vmul.f32 1.442695, %v1973_v53 }
 0xe12   : >> { %3366 = vpow2.f32 %v1988_v5  ;;  %v3378_v5 = vld [vmem:[#allocation9] sm:$0xff] (%p5267_p3)  }
 0xe13   : >> { %3368 = vpow2.f32 %v1992_v8  ;;  %2768 = vmatprep.subr.bf16.mxu0 (%p5267_p3), %v3378_v5 }
 0xe14   : >> { %3370 = vpow2.f32 %v1978_v32  ;;  %2769 = vmatpush3.bf16.msra.mxu0 (%p5267_p3), %v3378_v5 }
 0xe15   : >> { %3372 = vpow2.f32 %v1974_v3 }
 0xe16   : >> { %3374 = vpow2.f32 %v1976_v49 }
 0xe17   : >> { %3376 = vpow2.f32 %v1980_v29 }
 0xe18   : >> { %v3363_v62 = vpop.eup %3362 }
 0xe19   : >> { %v2004_v26 = vsel %vm1197_vm8, %v3363_v62, 0.0  ;;  %v3365_v14 = vpop.eup %3364 }
 0xe1a   : >> { %2005 = vadd.xlane.f32.xlu1 %v2004_v26  ;;  %v1998_v23 = vsel %vm1197_vm8, %v3365_v14, 0.0  ;;  %v5527_v26 = vmov %v5232_v57 }
 0xe1c   : >> { %v3367_v52 = vpop.eup %3366 }
 0xe1d   : >> { %v2018_v27 = vpack.c.bf16 %v3367_v52, %v3365_v14  ;;  %v3369_v59 = vpop.eup %3368  ;;  %v2001_v39 = vsel %vm1197_vm8, %v3367_v52, 0.0  ;;  %v5526_v14 = vmov %v5241_v55 }
 0xe1e   : >> { %1999 = vadd.xlane.f32.xlu1 %v1998_v23  ;;  %v2019_v16 = vpack.c.bf16 %v3369_v59, %v3363_v62  ;;  %v2007_v63 = vsel %vm1197_vm8, %v3369_v59, 0.0  ;;  %v3371_v12 = vpop.eup %3370  ;;  %v5524_v59 = vmov %v5244_v40  ;;  %v5525_v62 = vmov %v5229_v36  ;;  %v3379_v40 = vld [vmem:[#allocation9 + $0x8] sm:$0xff] (%p5267_p3)  }
 0xe1f   : >> { %2764 = vmatprep.mubr.msk.bf16.mxu1 %vm1197_vm8, %v2018_v27  ;;  %v1996_v22 = vmul.f32 %v3942_v44, %v3371_v12  ;;  %v3373_v35 = vpop.eup %3372  ;;  %v2016_v24 = vmul.f32 %v3926_v33, %v3371_v12  ;;  %2770 = vmatprep.subr.bf16.mxu0 (%p5267_p3), %v3379_v40 }
 0xe20   : >> { %2765 = vmatmul.mubr.msk.bf16.vlgmr.msra.gmra.mrb[0].mxu1 %vm1197_vm8, %v2019_v16  ;;  %v1994_v30 = vmul.f32 %v3950_v17, %v3373_v35  ;;  %v3375_v34 = vpop.eup %3374  ;;  %v2014_v56 = vmul.f32 %v3934_v28, %v3373_v35  ;;  %2771 = vmatpush3.bf16.msra.mxu0 (%p5267_p3), %v3379_v40 }
 0xe21   : >> { %v1995_v41 = vmul.f32 %v3946_v18, %v3375_v34  ;;  %v3377_v45 = vpop.eup %3376  ;;  %v2015_v18 = vmul.f32 %v3930_v25, %v3375_v34 }
 0xe22   : >> { %2002 = vadd.xlane.f32.xlu1 %v2001_v39  ;;  %v1997_v50 = vmul.f32 %v3938_v37, %v3377_v45  ;;  %v2017_v17 = vmul.f32 %v3922_v38, %v3377_v45 }
 0xe26   : >> { %2008 = vadd.xlane.f32.xlu1 %v2007_v63 }
 0xea7   : >> { %v2006_v21 = vpop.xlane.xlu1 %2005 }
 0xea8   : >> { %v2012_v20 = vadd.f32 %v2006_v21, %v1996_v22  }
 0xeab   : >> { %v2000_v10 = vpop.xlane.xlu1 %1999 }
 0xeac   : >> { %v2010_v54 = vadd.f32 %v2000_v10, %v1994_v30  }
 0xeae   : > { %3380 = vrcp.f32 (%p5267_p3), %v2010_v54 }
 0xeaf   : >> { %v2003_v4 = vpop.xlane.xlu1 %2002 }
 0xeb0   : >> { %v2011_v42 = vadd.f32 %v2003_v4, %v1995_v41  }
 0xeb2   : > { %3382 = vrcp.f32 (%p5267_p3), %v2011_v42 }
 0xeb3   : >> { %v2009_v31 = vpop.xlane.xlu1 %2008  ;;  %3384 = vrcp.f32 (%p5267_p3), %v2012_v20 }
 0xeb4   : >> { %v2013_v43 = vadd.f32 %v2009_v31, %v1997_v50  }
 0xeb6   : >> { %v5520_v37 = vmov %v2013_v43  ;;  %3386 = vrcp.f32 (%p5267_p3), %v2013_v43 }
 0xeb8   : > { %v3381_v36 = vpop.eup (%p5267_p3), %3380 }
 0xebc   : > { %v3383_v8 = vpop.eup (%p5267_p3), %3382 }
 0xebd   : > { %v3385_v55 = vpop.eup (%p5267_p3), %3384 }
 0xec0   : > { %v3387_v57 = vpop.eup (%p5267_p3), %3386 }
 0xef3   : >> { %v2766_v44 = vpop.f32.mrb[0].mxu1  ;;  %1853 = sbr.rel (!%p5267_p3) target bundleno = 3108 (0xc24), region = 186 }
 0xef4   : >> { %v2081_v19 = vadd.f32 %v2766_v44, %v2016_v24   ;;  %v2064_v46 = vpop.f32.mrb[1].mxu1  ;;  %v5521_v44 = vmov %v2012_v20 }
 0xef5   : >> { %v2079_v47 = vadd.f32 %v2064_v46, %v2014_v56   ;;  %v2767_v48 = vpop.f32.mrb[2].mxu1 }
 0xef6   : >> { %v2082_v53 = vadd.f32 %v2767_v48, %v2017_v17   ;;  %v2067_v58 = vpop.f32.mrb[3].mxu1  ;;  %v5517_v33 = vmov %v2081_v19  ;;  %v5523_v17 = vmov %v2010_v54  ;;  %v2089_v23 = vmul.f32 (%p5267_p3), %v3385_v55, %v2081_v19 }
 0xef7   : >> { %v2080_v60 = vadd.f32 %v2067_v58, %v2015_v18   ;;  %v5519_v28 = vmov %v2079_v47  ;;  %v5522_v18 = vmov %v2011_v42  ;;  %v2087_v26 = vmul.f32 (%p5267_p3), %v3381_v36, %v2079_v47 }
 0xef8   : >> { %v5516_v38 = vmov %v2082_v53  ;;  %v2090_v16 = vmul.f32 (%p5267_p3), %v3387_v57, %v2082_v53 }
 0xef9   : >> { %v5518_v25 = vmov %v2080_v60  ;;  %v2088_v52 = vmul.f32 (%p5267_p3), %v3383_v8, %v2080_v60 }
 0xefa   : > { %v2092_v9 = vpack.c.bf16 %v2090_v16, %v2089_v23 }
 0xefb   : > { %v2091_v27 = vpack.c.bf16 %v2088_v52, %v2087_v26 }
 0xefd   : > { %2095 = vrot.lane.b32.xlu0 %v2091_v27, %s3983_s20 }
 0xf01   : > { %2097 = vrot.lane.b32.xlu0 %v2092_v9, %s3983_s20  ;;  %s2654_s20 = sshll.u32 %s4067_s17, 9 }
 0xf02   : > { %s5349_s18 = scalar_lea.hbm %s5454_s9, %s2654_s20 }
 0xf6f   : > { %v2096_v61 = vpop.permute.xlu0 %2095 }
 0xf70   : > { %2101 = vst.msk [vmem:[#allocation5] sm:$0xff] %vm973_vm5, %v2096_v61 }
 0xf73   : > { %v2098_v11 = vpop.permute.xlu0 %2097 }
 0xf74   : > { %2102 = vst.msk [vmem:[#allocation5 + $0x8] sm:$0xff] %vm973_vm5, %v2098_v11 }
 0xf77   : > { %v2103_v13 = vld [vmem:[#allocation5] sm:$0xff] }
 0xf78   : > { %2772 = vmatprep.mubr.msk.bf16.mxu0 %vm409_vm0, %v2103_v13 }
 0xf7b   : > { %v2104_v15 = vld [vmem:[#allocation5 + $0x8] sm:$0xff] }
 0xf7c   : > { %2773 = vmatmul.mubr.msk.bf16.vlgmr.msra.gmra.mrb[0].mxu0 %vm409_vm0, %v2104_v15 }
0x104f   : > { %v2774_v7 = vpop.f32.mrb[0].mxu0 }
0x1050   : > { %v5310_v51 = vadd.f32 %v2774_v7, %v4171_v0  ;;  %v2161_v38 = vpop.f32.mrb[1].mxu0 }
0x1051   : > { %v5313_v33 = vadd.f32 %v2161_v38, %v4173_v1  ;;  %v2775_v25 = vpop.f32.mrb[2].mxu0 }
0x1052   : > { %2182 = vst.msk [vmem:[%s4615_s27 + $0x10] sm:$0xff] %vm409_vm0, %v5310_v51  ;;  %v5319_v28 = vadd.f32 %v2775_v25, %v4175_v2  ;;  %v2164_v37 = vpop.f32.mrb[3].mxu0  ;;  %v2187_v62 = vmul.f32 %v5310_v51, %v5310_v51 }
0x1053   : > { %2180 = vst.msk [vmem:[%s4615_s27] sm:$0xff] %vm409_vm0, %v5313_v33  ;;  %v5327_v0 = vadd.f32 %v2164_v37, %v4183_v6  ;;  %v2185_v1 = vmul.f32 %v5313_v33, %v5313_v33 }
0x1054   : > { %2183 = vst.msk [vmem:[%s4615_s27 + $0x18] sm:$0xff] %vm409_vm0, %v5319_v28  ;;  %v2195_v2 = vsel %vm409_vm0, %v2187_v62, 0.0  ;;  %v2188_v39 = vmul.f32 %v5319_v28, %v5319_v28 }
0x1055   : > { %2181 = vst.msk [vmem:[%s4615_s27 + $0x8] sm:$0xff] %vm409_vm0, %v5327_v0  ;;  %2196 = vadd.xlane.f32.xlu0 %v2195_v2  ;;  %v2189_v14 = vsel %vm409_vm0, %v2185_v1, 0.0  ;;  %v2186_v6 = vmul.f32 %v5327_v0, %v5327_v0 }
0x1056   : > { %2190 = vadd.xlane.f32.xlu1 %v2189_v14  ;;  %v2198_v63 = vsel %vm409_vm0, %v2188_v39, 0.0 }
0x1057   : > { %v2192_v59 = vsel %vm409_vm0, %v2186_v6, 0.0 }
0x105a   : > { %2193 = vadd.xlane.f32.xlu1 %v2192_v59 }
0x105e   : > { %2199 = vadd.xlane.f32.xlu1 %v2198_v63 }
0x105f   : > { %3465 = shalt.err (!%p3462_p6)
}
0x1060   : > { %s3466_s27 = scalar_lea.hbm %s5349_s18, 512  ;;  %s3470_s21 = scalar_lea.hbm %s5454_s9, 1024 }
0x1061   : > { %p3467_p9 = scmp.ne.s32.totalorder %s5349_s18, %s3466_s27  ;;  %p3471_p1 = scmp.lt.u32.totalorder %s5349_s18, %s5454_s9 }
0x1062   : > { %p3472_p2 = scmp.lt.u32.totalorder %s3470_s21, %s3466_s27  ;;  %p3474_p4 = scmp.lt.u32.totalorder %s3466_s27, %s5349_s18 }
0x1063   : > { %p3468_p10 = pnand %p3467_p9, %p5528_p7 }
0x1064   : > { %p3473_p3 = por %p3472_p2, %p3471_p1 }
0x1065   : > { %p3469_p12 = pneg %p3468_p10 }
0x1066   : > { %p3475_p8 = por %p3474_p4, %p3473_p3 }
0x1068   : > { %p3476_p11 = pnand %p3475_p8, %p3469_p12 }
0x106a   : > { %3479 = shalt.err (!%p3476_p11)
}
0x106b   : > { %s3988_s19 = smov 128   ;;  %v2636_v41 = vld [vmem:[%s5447_s2] ss:$0 sm:$0xff]  ;;  %vm2243_vm0 = vcmask 257024   ;;  %s2254_s22 = scalar_lea.sflag [#allocation13], %s4192_s12 }
0x106c   : > { %2788 = dma.vmem_to_hbm [thread:$0]  (%p5528_p7), %s5352_s26, 512, %s5349_s18, %s2249_s29, %s3988_s19, %s3988_s19, %s3976_s25  }
0x106d   : > { %s2655_s26 = sshll.u32 %s4067_s17, 8  ;;  %s2283_s29 = sshll.u32 %s4619_s15, 4  ;;  %s5399_s29 = int_to_ptr.vmem [resolvable:$true] %s2283_s29 }
0x106e   : > { %s5397_s20 = scalar_lea.hbm %s5455_s10, %s2655_s26  ;;  %s3480_s21 = scalar_lea.vmem %s5399_s29, 256 }
0x106f   : > { %p3481_p13 = scmp.ne.s32.totalorder %s5399_s29, %s3480_s21  ;;  %s3989_s17 = smov [#allocation12]  }
0x1070   : > { %s3484_s24 = sshll.u32 %s3989_s17, 4  ;;  %s3485_s24 = int_to_ptr.vmem [resolvable:$false] %s3484_s24 }
0x1071   : > { %p3482_p5 = pnand %p3481_p13, %p5528_p7  ;;  %s3486_s30 = scalar_lea.vmem %s3485_s24, 512 }
0x1072   : > { %p3487_p6 = scmp.lt.s32.totalorder %s5399_s29, %s3485_s24  ;;  %p3488_p9 = scmp.lt.s32.totalorder %s3486_s30, %s3480_s21 }
0x1073   : > { %p3483_p0 = pneg %p3482_p5 }
0x1074   : > { %p3489_p10 = por %p3488_p9, %p3487_p6 }
0x1076   : > { %p3490_p12 = pnand %p3489_p10, %p3483_p0 }
0x10e2   : > { %v2197_v32 = vpop.xlane.xlu0 %2196 }
0x10e3   : > { %v2203_v3 = vmul.f32 0.03125, %v2197_v32  ;;  %v2191_v49 = vpop.xlane.xlu1 %2190 }
0x10e4   : > { %v2201_v29 = vmul.f32 0.03125, %v2191_v49 }
0x10e5   : > { %v2207_v12 = vadd.f32 1e-06, %v2203_v3 }
0x10e6   : > { %v2205_v22 = vadd.f32 1e-06, %v2201_v29 }
0x10e7   : > { %3388 = vrsqrt.f32 %v2207_v12  ;;  %v2194_v35 = vpop.xlane.xlu1 %2193 }
0x10e8   : > { %3390 = vrsqrt.f32 %v2205_v22  ;;  %v2202_v21 = vmul.f32 0.03125, %v2194_v35 }
0x10ea   : > { %v2206_v20 = vadd.f32 1e-06, %v2202_v21 }
0x10eb   : > { %v2200_v30 = vpop.xlane.xlu1 %2199 }
0x10ec   : > { %3392 = vrsqrt.f32 %v2206_v20  ;;  %v2204_v34 = vmul.f32 0.03125, %v2200_v30 }
0x10ee   : > { %v2208_v10 = vadd.f32 1e-06, %v2204_v34 }
0x10f0   : > { %3394 = vrsqrt.f32 %v2208_v10 }
0x10f1   : > { %v3389_v54 = vpop.eup %3388 }
0x10f2   : > { %v3391_v45 = vpop.eup %3390  ;;  %v2215_v4 = vmul.f32 %v3389_v54, %v5310_v51 }
0x10f3   : > { %v2213_v42 = vmul.f32 %v3391_v45, %v5313_v33 }
0x10f4   : > { %v2225_v50 = vmul.f32 %v2636_v41, %v2215_v4 }
0x10f5   : > { %v2223_v31 = vmul.f32 %v2636_v41, %v2213_v42 }
0x10f6   : > { %v3393_v43 = vpop.eup %3392  ;;  %v2652_v24 = vpack.c.bf16 %v2225_v50, %v2225_v50 }
0x10f7   : > { %v2650_v44 = vpack.c.bf16 %v2223_v31, %v2223_v31  ;;  %v2214_v56 = vmul.f32 %v3393_v43, %v5327_v0 }
0x10f8   : > { %2246 = vst.msk [vmem:[%s4619_s15 + $0x8] sm:$0xf] %vm2243_vm0, %v2652_v24 }
0x10f9   : > { %v2224_v19 = vmul.f32 %v2636_v41, %v2214_v56  ;;  %2244 = vst.msk [vmem:[%s4619_s15] sm:$0xf] %vm2243_vm0, %v2650_v44 }
0x10fa   : > { %v3395_v46 = vpop.eup %3394 }
0x10fb   : > { %v2651_v17 = vpack.c.bf16 %v2224_v19, %v2224_v19  ;;  %v2216_v47 = vmul.f32 %v3395_v46, %v5319_v28 }
0x10fd   : > { %v2226_v48 = vmul.f32 %v2636_v41, %v2216_v47  ;;  %2245 = vst.msk [vmem:[%s4619_s15 + $0x4] sm:$0xf] %vm2243_vm0, %v2651_v17 }
0x10ff   : > { %v2653_v18 = vpack.c.bf16 %v2226_v48, %v2226_v48 }
0x1101   : > { %2247 = vst.msk [vmem:[%s4619_s15 + $0xc] sm:$0xf] %vm2243_vm0, %v2653_v18 }
0x1102   : > { %3493 = shalt.err (!%p3490_p12)
}
0x1103   : > { %s3494_s15 = scalar_lea.hbm %s5397_s20, 256  ;;  %s3498_s18 = scalar_lea.hbm %s5455_s10, 512 }
0x1104   : > { %p3495_p1 = scmp.ne.s32.totalorder %s5397_s20, %s3494_s15  ;;  %p3499_p4 = scmp.lt.u32.totalorder %s5397_s20, %s5455_s10 }
0x1105   : > { %p3500_p8 = scmp.lt.u32.totalorder %s3498_s18, %s3494_s15  ;;  %p3502_p13 = scmp.lt.u32.totalorder %s3494_s15, %s5397_s20 }
0x1106   : > { %p3496_p2 = pnand %p3495_p1, %p5528_p7 }
0x1107   : > { %p3501_p11 = por %p3500_p8, %p3499_p4 }
0x1108   : > { %p3497_p3 = pneg %p3496_p2 }
0x1109   : > { %p3503_p5 = por %p3502_p13, %p3501_p11 }
0x110b   : > { %p3504_p0 = pnand %p3503_p5, %p3497_p3 }
0x110d   : > { %3507 = shalt.err (!%p3504_p0)
}
0x110e   : > { %s3990_s27 = smov 64  }
0x110f   : > { %2789 = dma.vmem_to_hbm [thread:$0]  (%p5528_p7), %s5399_s29, 256, %s5397_s20, %s2254_s22, %s3990_s27, %s3990_s27, %s3978_s28  }
0x1110 PF: > { %s5529_s21 = sld [smem:[#allocation21_spill]]  ;;  %p2810_p6 = scmp.ge.s32.totalorder %s3762_s16, 2 }
0x1111   : > { %s2298_s17 = sand.u32 1, %s3750_s13  }
0x1112   : > { %s2299_s24 = scalar_lea.sflag [#allocation8], %s2298_s17 }
0x1116   : > { %p5530_p9 = scmp.ne.s32.totalorder %s5529_s21, 0 }
0x1118   : > { %p2800_p10 = pnand %p2810_p6, %p5530_p9 }
0x111a   : > { %3741 = dma.done.wait (!%p2800_p10), %s2299_s24, 512  }
0x111b   : > { %3743 = vsyncadd (!%p2800_p10), %s2299_s24, 4294966784  ;;  %s2308_s30 = scalar_lea.sflag [#allocation13], %s2298_s17 }
0x111c   : > { %3745 = dma.done.wait (!%p2800_p10), %s2308_s30, 256  }
0x111d   : > { %3747 = vsyncadd (!%p2800_p10), %s2308_s30, 4294967040  ;;  %s5531_s16 = sld [smem:[#allocation19_spill]]  ;;  %s5532_s23 = sld [smem:[#allocation18_spill]] }
0x111e   : > { %s5533_s15 = sld [smem:[#allocation20_spill]]  ;;  %s5534_s13 = smov %s3754_s14 }
0x1123   : > { %p26_p7 = scmp.ge.s32.totalorder %s5531_s16, 4   ;;  %s5535_s14 = smov %s5532_s23 }
0x1125   :  { %28 = sbr.rel (!%p26_p7) target bundleno = 7 (0x7), region = 197 }
0x112c   :  { %2313 = vsyncpa [#allocation7], 1 }
0x112d   :  { %2315 = vsyncpa [#allocation7 + $0x1], 1 }
0x112e   :  { %2316 = vsyncpa [#allocation10], 1 }
0x112f   :  { %2317 = vsyncpa [#allocation8], 1 }
0x1130   :  { %2319 = vsyncpa [#allocation8 + $0x1], 1 }
0x1131   :  { %2320 = vsyncpa [#allocation13], 1 }
0x1132   :  { %2322 = vsyncpa [#allocation13 + $0x1], 1 }

</bundles_post_ra>
